<compile_context>
chip_gen: v7x
topology: tpu7x:2x2x1
jax: 0.10.0
libtpu: 0.0.40
codegen_flags: <defaults>
</compile_context>

<pallas_src>
import functools

import jax
import jax.numpy as jnp
import numpy as np
from jax.experimental import pallas as pl
from jax.experimental.pallas import tpu as pltpu

EPS = 1e-5


# ----------------------------------------------------------------------------
# Fused kernel: conv1 -> BN+ReLU -> conv2 -> BN+ReLU, single gridless program.
# ----------------------------------------------------------------------------
def _fused_kernel(x_ref, bw1_ref, bw2_ref, g_ref, beta_ref,
                  s1_ref, s1t_ref, s2_ref, s2t_ref, o_ref, z1_ref,
                  *, N, H, HO1, WO1, HO2, WO2):
    # x_ref  : (N*H + 8, W*Cin)   rows = (n, h), lanes = (w, c); tail rows zero
    # bw1_ref: (3, W*Cin, L1)     banded conv1 weights (L1 = 128-padded WO1*Cm)
    # bw2_ref: (3, L1,    L2)     banded conv2 weights (L2 = 128-padded WO2*Cm)
    # g_ref, beta_ref: (1, Cm)    BatchNorm gamma / beta
    # s1_ref : (L1, Cm)  s1t_ref: (Cm, L1)   channel selectors stage 1
    # s2_ref : (L2, Cm)  s2t_ref: (Cm, L2)   channel selectors stage 2
    # o_ref  : (N*H, L2)          rows = (n, h), lanes = (wo2, c) 128-padded
    # z1_ref : (N*H + 8, L1) f32  VMEM scratch for post-BN1 activations
    f32 = jnp.float32
    NROWS = N * H
    gamma = g_ref[...]                                   # (1, Cm) f32
    beta = beta_ref[...]                                 # (1, Cm) f32

    # Per-row "within-batch height" index; rows with h >= HOx are garbage
    # (mixed-batch conv rows at batch boundaries) and are masked out of BN.
    row = jax.lax.broadcasted_iota(jnp.int32, (NROWS, 1), 0)
    h_in_batch = row % H

    def bn_relu(acc, mask, s_ref, st_ref, count):
        # acc: (NROWS, L) f32; mask: (NROWS, 1) bool over valid rows.
        masked = jnp.where(mask, acc, 0.0)               # NaN-safe row masking
        col_sum = masked.sum(axis=0, keepdims=True)      # (1, L)
        col_ssq = (masked * masked).sum(axis=0, keepdims=True)
        stats = jnp.concatenate([col_sum, col_ssq], axis=0)            # (2, L)
        ch = jnp.dot(stats, s_ref[...], preferred_element_type=f32)    # (2, Cm)
        inv_cnt = 1.0 / count
        mean = ch[0:1] * inv_cnt
        var = jnp.maximum(ch[1:2] * inv_cnt - mean * mean, 0.0)  # biased var
        inv_std = jax.lax.rsqrt(var + EPS)
        scale_c = gamma * inv_std                                       # (1, Cm)
        off_c = beta - mean * scale_c                                   # (1, Cm)
        so = jnp.concatenate([scale_c, off_c], axis=0)                  # (2, Cm)
        so_row = jnp.dot(so, st_ref[...], preferred_element_type=f32)   # (2, L)
        return jnp.maximum(acc * so_row[0:1] + so_row[1:2], 0.0)

    # ---- conv1: one big-M matmul per dy tap over all batches at once --------
    acc1 = None
    for dy in range(bw1_ref.shape[0]):
        p = jnp.dot(x_ref[dy:dy + NROWS, :], bw1_ref[dy],
                    preferred_element_type=f32)          # (NROWS, L1)
        acc1 = p if acc1 is None else acc1 + p

    # ---- BatchNorm #1 (batch stats over valid rows/lanes) + ReLU ------------
    z1 = bn_relu(acc1, h_in_batch < HO1, s1_ref, s1t_ref, N * HO1 * WO1)
    z1_ref[0:NROWS, :] = z1
    pad_rows = z1_ref.shape[0] - NROWS
    z1_ref[NROWS:NROWS + pad_rows, :] = jnp.zeros((pad_rows, z1_ref.shape[1]),
                                                  f32)

    # ---- conv2: same banded-matmul structure, fed from the z1 scratch ref ---
    acc2 = None
    for dy in range(bw2_ref.shape[0]):
        p = jnp.dot(z1_ref[dy:dy + NROWS, :], bw2_ref[dy],
                    preferred_element_type=f32)          # (NROWS, L2)
        acc2 = p if acc2 is None else acc2 + p

    # ---- BatchNorm #2 (same gamma/beta, fresh batch stats) + ReLU -----------
    z2 = bn_relu(acc2, h_in_batch < HO2, s2_ref, s2t_ref, N * HO2 * WO2)

    # Single aligned, unmasked, lane-dense store; wrapper strips pad rows/lanes.
    o_ref[...] = z2.astype(o_ref.dtype)


# ----------------------------------------------------------------------------
# Wrapper-side weight / selector preprocessing (tiny, runs in XLA).
# ----------------------------------------------------------------------------
def _banded_weights(w, w_in, in_pad, out_pad):
    """Fold the dx shift of an HWIO (kh, kw, Cin, Cout) conv weight into banded
    matrices so a VALID conv becomes  sum_dy  X[dy:dy+Ho, :] @ B[dy]  with the
    activation packed as rows = H, lanes = (W, Cin).  Lane dims are zero-padded
    to `in_pad` / `out_pad` (multiples of 128) so every matmul is lane-dense.

    B[dy, wi*Cin+ci, wo*Cout+co] = w[dy, wi-wo, ci, co] (0 if wi-wo not in [0, kw)).
    TODO(synk): at production W the band is ~W/kw zeros; tile block-diagonally
    or use pltpu.roll on the lane axis to avoid the redundant MXU FLOPs.
    """
    kh, kw, cin, cout = w.shape
    wo = w_in - kw + 1
    wi = jnp.arange(w_in)[:, None, None]
    dx = jnp.arange(kw)[None, :, None]
    wop = jnp.arange(wo)[None, None, :]
    sel = (wi == wop + dx).astype(w.dtype)                  # (w_in, kw, wo)
    b = jnp.einsum('wdv,ydio->ywivo', sel, w)               # (kh, w_in, cin, wo, cout)
    b = b.reshape(kh, w_in * cin, wo * cout)
    return jnp.pad(b, ((0, 0),
                       (0, in_pad - w_in * cin),
                       (0, out_pad - wo * cout)))


def _channel_selector(wo, cm, lanes, dtype):
    """S[l, c'] = 1 if lane l = w*cm + c' with w < wo (pad lanes are zero).
    Used to reduce (and, transposed, broadcast) per-channel quantities in the
    packed, 128-padded (w, c) lane layout."""
    lane = jnp.arange(lanes)[:, None]
    ch = jnp.arange(cm)[None, :]
    s = ((lane % cm == ch) & (lane < wo * cm)).astype(dtype)
    return s, jnp.transpose(s)


# ----------------------------------------------------------------------------
# Full module forward (NCHW in / NCHW out, like the PyTorch module).
# ----------------------------------------------------------------------------
def conv3dup_forward(x_nchw, params):
    w1, b1, w2, b2, gamma, beta = params
    # Conv bias followed by batch-stat BatchNorm cancels exactly in the forward
    # output.  TODO(synk): reinstate biases if eval-mode (running-stat) BN is
    # ever needed; running_mean/running_var updates are not modeled.
    del b1, b2
    N, Cin, H, W = x_nchw.shape
    Cm = w1.shape[-1]
    HO1, WO1 = H - w1.shape[0] + 1, W - w1.shape[1] + 1
    HO2, WO2 = HO1 - w2.shape[0] + 1, WO1 - w2.shape[1] + 1

    def pad128(n):
        return max(128, ((n + 127) // 128) * 128)

    L0 = W * Cin                       # input lane dim (matmul K; no pad needed)
    L1 = pad128(WO1 * Cm)              # conv1 output lanes, 128-padded
    L2 = pad128(WO2 * Cm)              # conv2 output lanes, 128-padded
    NROWS = N * H
    ROW_PAD = 8                        # zero tail rows for the dy-shifted reads
    f32 = jnp.float32

    # NCHW -> packed 2-D slab: rows = (n, h), lanes = (w, c), plus zero tail rows.
    xr = jnp.transpose(x_nchw, (0, 2, 3, 1)).reshape(NROWS, L0)
    xr = jnp.pad(xr, ((0, ROW_PAD), (0, 0)))

    bw1 = _banded_weights(w1, W, L0, L1)                 # (3, L0, L1)
    bw2 = _banded_weights(w2, WO1, L1, L2)               # (3, L1, L2)
    s1, s1t = _channel_selector(WO1, Cm, L1, f32)
    s2, s2t = _channel_selector(WO2, Cm, L2, f32)
    g2d = gamma.reshape(1, Cm).astype(f32)
    b2d = beta.reshape(1, Cm).astype(f32)

    operands = (xr, bw1, bw2, g2d, b2d, s1, s1t, s2, s2t)
    out_shape = jax.ShapeDtypeStruct((NROWS, L2), x_nchw.dtype)

    # Derive the VMEM limit from the actual slab sizes instead of a blanket
    # constant (leaves headroom; stays inside v7x's 64 MiB physical VMEM).
    slab_bytes = sum(int(a.size) * a.dtype.itemsize for a in operands)
    slab_bytes += int(np.prod(out_shape.shape)) * jnp.dtype(out_shape.dtype).itemsize
    slab_bytes += (NROWS + ROW_PAD) * L1 * 4             # z1 scratch
    vmem_limit = int(min(2 * slab_bytes + (4 << 20), 64 << 20))

    kernel = functools.partial(_fused_kernel, N=N, H=H, HO1=HO1, WO1=WO1,
                               HO2=HO2, WO2=WO2)
    out2d = pl.pallas_call(
        kernel,
        out_shape=out_shape,
        scratch_shapes=[pltpu.VMEM((NROWS + ROW_PAD, L1), f32)],
        compiler_params=pltpu.CompilerParams(vmem_limit_bytes=vmem_limit),
    )(*operands)

    # Strip row/lane padding: (N*H, L2) -> (N, H, L2//Cm, Cm) -> valid window.
    out = out2d.reshape(N, H, L2 // Cm, Cm)[:, :HO2, :WO2, :]
    return jnp.transpose(out, (0, 3, 1, 2))              # NHWC -> NCHW


# ----------------------------------------------------------------------------
# Pure-JAX reference for validation (includes the conv biases; they cancel).
# ----------------------------------------------------------------------------
def _bn_relu_ref(y, gamma, beta):
    mean = jnp.mean(y, axis=(0, 1, 2), keepdims=True)
    var = jnp.mean((y - mean) ** 2, axis=(0, 1, 2), keepdims=True)
    yn = (y - mean) * jax.lax.rsqrt(var + EPS) * gamma + beta
    return jnp.maximum(yn, 0.0)


def ref_forward(x_nchw, params):
    w1, b1, w2, b2, gamma, beta = params
    x = jnp.transpose(x_nchw, (0, 2, 3, 1))
    dn = jax.lax.conv_dimension_numbers(x.shape, w1.shape,
                                        ("NHWC", "HWIO", "NHWC"))
    y = jax.lax.conv_general_dilated(x, w1, (1, 1), "VALID",
                                     dimension_numbers=dn) + b1
    y = _bn_relu_ref(y, gamma, beta)
    dn2 = jax.lax.conv_dimension_numbers(y.shape, w2.shape,
                                         ("NHWC", "HWIO", "NHWC"))
    y = jax.lax.conv_general_dilated(y, w2, (1, 1), "VALID",
                                     dimension_numbers=dn2) + b2
    y = _bn_relu_ref(y, gamma, beta)
    return jnp.transpose(y, (0, 3, 1, 2))


if __name__ == "__main__":
    # Small shapes: batch=2, channel=16 (so c = channel//2 = 8), spatial=16x16.
    N, CH, H, W = 2, 16, 16, 16
    C_half = CH // 2

    key = jax.random.PRNGKey(0)
    kx, kw1, kb1, kw2, kb2, kg, kbeta = jax.random.split(key, 7)

    x = jax.random.normal(kx, (N, CH, H, W), jnp.float32)           # NCHW input
    # Parameter shapes match nn.Conv2d / nn.BatchNorm2d (conv weights in HWIO).
    w1 = jax.random.normal(kw1, (3, 3, CH, C_half), jnp.float32) * 0.1
    b1 = jax.random.normal(kb1, (C_half,), jnp.float32) * 0.1
    w2 = jax.random.normal(kw2, (3, 3, C_half, C_half), jnp.float32) * 0.1
    b2 = jax.random.normal(kb2, (C_half,), jnp.float32) * 0.1
    gamma = jax.random.uniform(kg, (C_half,), jnp.float32, 0.5, 1.5)
    beta = jax.random.normal(kbeta, (C_half,), jnp.float32) * 0.1
    params = (w1, b1, w2, b2, gamma, beta)

    out = jax.block_until_ready(jax.jit(conv3dup_forward)(x, params))
    ref = jax.block_until_ready(jax.jit(ref_forward)(x, params))

    assert out.shape == (N, C_half, H - 4, W - 4), out.shape
    np.testing.assert_allclose(np.asarray(out), np.asarray(ref),
                               rtol=1e-4, atol=1e-4)
    print("KERNEL_OK")
</pallas_src>

<mosaic_0001>
module attributes {stable_mosaic.version = 11 : i64} {
  func.func @_fused_kernel(%arg0: memref<40x256xf32, #tpu.memory_space<vmem>>, %arg1: memref<3x256x128xf32, #tpu.memory_space<vmem>>, %arg2: memref<3x128x128xf32, #tpu.memory_space<vmem>>, %arg3: memref<1x8xf32, #tpu.memory_space<vmem>>, %arg4: memref<1x8xf32, #tpu.memory_space<vmem>>, %arg5: memref<128x8xf32, #tpu.memory_space<vmem>>, %arg6: memref<8x128xf32, #tpu.memory_space<vmem>>, %arg7: memref<128x8xf32, #tpu.memory_space<vmem>>, %arg8: memref<8x128xf32, #tpu.memory_space<vmem>>, %arg9: memref<32x128xf32, #tpu.memory_space<vmem>>, %arg10: memref<40x128xf32, #tpu.memory_space<vmem>>) attributes {dimension_semantics = [], scalar_prefetch = 0 : i64, scratch_operands = 1 : i64, tpu.core_type = #tpu.core_type<tc>} {
    %c0 = arith.constant 0 : index
    %c0_0 = arith.constant 0 : index
    %0 = vector.load %arg3[%c0, %c0_0] : memref<1x8xf32, #tpu.memory_space<vmem>>, vector<1x8xf32>
    %c0_1 = arith.constant 0 : index
    %c0_2 = arith.constant 0 : index
    %1 = vector.load %arg4[%c0_1, %c0_2] : memref<1x8xf32, #tpu.memory_space<vmem>>, vector<1x8xf32>
    %2 = tpu.iota {dimensions = array<i32: 0>} : vector<32x1xi32>
    %c16_i32 = arith.constant 16 : i32
    %c0_i32 = arith.constant 0 : i32
    %3 = arith.cmpi eq, %c16_i32, %c0_i32 : i32
    %c1_i32 = arith.constant 1 : i32
    %4 = arith.select %3, %c1_i32, %c16_i32 : i32
    %5 = vector.broadcast %4 : i32 to vector<32x1xi32>
    %6 = arith.remsi %2, %5 : vector<32x1xi32>
    %c0_i32_3 = arith.constant 0 : i32
    %7 = vector.broadcast %c0_i32_3 : i32 to vector<32x1xi32>
    %8 = arith.cmpi ne, %6, %7 : vector<32x1xi32>
    %c0_i32_4 = arith.constant 0 : i32
    %9 = vector.broadcast %c0_i32_4 : i32 to vector<32x1xi32>
    %10 = arith.cmpi slt, %6, %9 : vector<32x1xi32>
    %c0_i32_5 = arith.constant 0 : i32
    %11 = arith.cmpi slt, %4, %c0_i32_5 : i32
    %12 = vector.broadcast %11 : i1 to vector<32x1xi1>
    %13 = vector.broadcast %12 : vector<32x1xi1> to vector<32x1xi1>
    %14 = arith.xori %10, %13 : vector<32x1xi1>
    %15 = arith.andi %14, %8 : vector<32x1xi1>
    %16 = vector.broadcast %4 : i32 to vector<32x1xi32>
    %17 = arith.addi %6, %16 : vector<32x1xi32>
    %18 = arith.select %15, %17, %6 : vector<32x1xi1>, vector<32x1xi32>
    %c0_6 = arith.constant 0 : index
    %c0_7 = arith.constant 0 : index
    %19 = vector.load %arg0[%c0_6, %c0_7] : memref<40x256xf32, #tpu.memory_space<vmem>>, vector<32x256xf32>
    %c0_8 = arith.constant 0 : index
    %c0_9 = arith.constant 0 : index
    %c0_10 = arith.constant 0 : index
    %20 = vector.load %arg1[%c0_8, %c0_9, %c0_10] : memref<3x256x128xf32, #tpu.memory_space<vmem>>, vector<1x256x128xf32>
    %21 = vector.shape_cast %20 : vector<1x256x128xf32> to vector<256x128xf32>
    %cst = arith.constant dense<0.000000e+00> : vector<32x128xf32>
    %22 = tpu.matmul %19, %21, %cst {dimension_numbers = #tpu.dot_dimension_numbers<[1], [0], [0], [1], [0, 0, 1, 1], [], []>} : vector<32x256xf32>, vector<256x128xf32>, vector<32x128xf32> -> vector<32x128xf32>
    %c1 = arith.constant 1 : index
    %c0_11 = arith.constant 0 : index
    %23 = vector.load %arg0[%c1, %c0_11] : memref<40x256xf32, #tpu.memory_space<vmem>>, vector<32x256xf32>
    %c1_12 = arith.constant 1 : index
    %c0_13 = arith.constant 0 : index
    %c0_14 = arith.constant 0 : index
    %24 = vector.load %arg1[%c1_12, %c0_13, %c0_14] : memref<3x256x128xf32, #tpu.memory_space<vmem>>, vector<1x256x128xf32>
    %25 = vector.shape_cast %24 : vector<1x256x128xf32> to vector<256x128xf32>
    %cst_15 = arith.constant dense<0.000000e+00> : vector<32x128xf32>
    %26 = tpu.matmul %23, %25, %cst_15 {dimension_numbers = #tpu.dot_dimension_numbers<[1], [0], [0], [1], [0, 0, 1, 1], [], []>} : vector<32x256xf32>, vector<256x128xf32>, vector<32x128xf32> -> vector<32x128xf32>
    %27 = arith.addf %22, %26 : vector<32x128xf32>
    %c2 = arith.constant 2 : index
    %c0_16 = arith.constant 0 : index
    %28 = vector.load %arg0[%c2, %c0_16] : memref<40x256xf32, #tpu.memory_space<vmem>>, vector<32x256xf32>
    %c2_17 = arith.constant 2 : index
    %c0_18 = arith.constant 0 : index
    %c0_19 = arith.constant 0 : index
    %29 = vector.load %arg1[%c2_17, %c0_18, %c0_19] : memref<3x256x128xf32, #tpu.memory_space<vmem>>, vector<1x256x128xf32>
    %30 = vector.shape_cast %29 : vector<1x256x128xf32> to vector<256x128xf32>
    %cst_20 = arith.constant dense<0.000000e+00> : vector<32x128xf32>
    %31 = tpu.matmul %28, %30, %cst_20 {dimension_numbers = #tpu.dot_dimension_numbers<[1], [0], [0], [1], [0, 0, 1, 1], [], []>} : vector<32x256xf32>, vector<256x128xf32>, vector<32x128xf32> -> vector<32x128xf32>
    %32 = arith.addf %27, %31 : vector<32x128xf32>
    %c14_i32 = arith.constant 14 : i32
    %33 = vector.broadcast %c14_i32 : i32 to vector<32x1xi32>
    %34 = arith.cmpi slt, %18, %33 : vector<32x1xi32>
    %cst_21 = arith.constant 0.000000e+00 : f32
    %35 = vector.shape_cast %34 : vector<32x1xi1> to vector<32x1xi1>
    %36 = vector.broadcast %35 : vector<32x1xi1> to vector<32x128xi1>
    %37 = vector.broadcast %cst_21 : f32 to vector<32x128xf32>
    %38 = arith.select %36, %32, %37 : vector<32x128xi1>, vector<32x128xf32>
    %cst_22 = arith.constant dense<0.000000e+00> : vector<128xf32>
    %39 = vector.multi_reduction <add>, %38, %cst_22 [0] : vector<32x128xf32> to vector<128xf32>
    %40 = vector.shape_cast %39 : vector<128xf32> to vector<1x128xf32>
    %41 = arith.mulf %38, %38 : vector<32x128xf32>
    %cst_23 = arith.constant dense<0.000000e+00> : vector<128xf32>
    %42 = vector.multi_reduction <add>, %41, %cst_23 [0] : vector<32x128xf32> to vector<128xf32>
    %43 = vector.shape_cast %42 : vector<128xf32> to vector<1x128xf32>
    %44 = tpu.concatenate %40, %43 in 0 : vector<1x128xf32>, vector<1x128xf32> -> vector<2x128xf32>
    %c0_24 = arith.constant 0 : index
    %c0_25 = arith.constant 0 : index
    %45 = vector.load %arg5[%c0_24, %c0_25] : memref<128x8xf32, #tpu.memory_space<vmem>>, vector<128x8xf32>
    %cst_26 = arith.constant dense<0.000000e+00> : vector<2x8xf32>
    %46 = tpu.matmul %44, %45, %cst_26 {dimension_numbers = #tpu.dot_dimension_numbers<[1], [0], [0], [1], [0, 0, 1, 1], [], []>} : vector<2x128xf32>, vector<128x8xf32>, vector<2x8xf32> -> vector<2x8xf32>
    %47 = vector.extract_strided_slice %46 {offsets = [0, 0], sizes = [1, 8], strides = [1, 1]} : vector<2x8xf32> to vector<1x8xf32>
    %cst_27 = arith.constant 0.00255102036 : f32
    %48 = vector.broadcast %cst_27 : f32 to vector<1x8xf32>
    %49 = arith.mulf %47, %48 : vector<1x8xf32>
    %50 = vector.extract_strided_slice %46 {offsets = [1, 0], sizes = [1, 8], strides = [1, 1]} : vector<2x8xf32> to vector<1x8xf32>
    %cst_28 = arith.constant 0.00255102036 : f32
    %51 = vector.broadcast %cst_28 : f32 to vector<1x8xf32>
    %52 = arith.mulf %50, %51 : vector<1x8xf32>
    %53 = arith.mulf %49, %49 : vector<1x8xf32>
    %54 = arith.subf %52, %53 : vector<1x8xf32>
    %cst_29 = arith.constant 0.000000e+00 : f32
    %55 = vector.broadcast %cst_29 : f32 to vector<1x8xf32>
    %56 = arith.maximumf %54, %55 : vector<1x8xf32>
    %cst_30 = arith.constant 9.99999974E-6 : f32
    %57 = vector.broadcast %cst_30 : f32 to vector<1x8xf32>
    %58 = arith.addf %56, %57 : vector<1x8xf32>
    %59 = math.rsqrt %58 : vector<1x8xf32>
    %60 = arith.mulf %0, %59 : vector<1x8xf32>
    %61 = arith.mulf %49, %60 : vector<1x8xf32>
    %62 = arith.subf %1, %61 : vector<1x8xf32>
    %63 = tpu.concatenate %60, %62 in 0 : vector<1x8xf32>, vector<1x8xf32> -> vector<2x8xf32>
    %c0_31 = arith.constant 0 : index
    %c0_32 = arith.constant 0 : index
    %64 = vector.load %arg6[%c0_31, %c0_32] : memref<8x128xf32, #tpu.memory_space<vmem>>, vector<8x128xf32>
    %cst_33 = arith.constant dense<0.000000e+00> : vector<2x128xf32>
    %65 = tpu.matmul %63, %64, %cst_33 {dimension_numbers = #tpu.dot_dimension_numbers<[1], [0], [0], [1], [0, 0, 1, 1], [], []>} : vector<2x8xf32>, vector<8x128xf32>, vector<2x128xf32> -> vector<2x128xf32>
    %66 = vector.extract_strided_slice %65 {offsets = [0, 0], sizes = [1, 128], strides = [1, 1]} : vector<2x128xf32> to vector<1x128xf32>
    %67 = vector.broadcast %66 : vector<1x128xf32> to vector<32x128xf32>
    %68 = arith.mulf %32, %67 : vector<32x128xf32>
    %69 = vector.extract_strided_slice %65 {offsets = [1, 0], sizes = [1, 128], strides = [1, 1]} : vector<2x128xf32> to vector<1x128xf32>
    %70 = vector.broadcast %69 : vector<1x128xf32> to vector<32x128xf32>
    %71 = arith.addf %68, %70 : vector<32x128xf32>
    %cst_34 = arith.constant 0.000000e+00 : f32
    %72 = vector.broadcast %cst_34 : f32 to vector<32x128xf32>
    %73 = arith.maximumf %71, %72 : vector<32x128xf32>
    %c0_35 = arith.constant 0 : index
    %c0_36 = arith.constant 0 : index
    %74 = vector.load %arg10[%c0_35, %c0_36] : memref<40x128xf32, #tpu.memory_space<vmem>>, vector<32x128xf32>
    tpu.vector_store %arg10[%c0_35, %c0_36], %73 {strides = array<i32>} : memref<40x128xf32, #tpu.memory_space<vmem>>, vector<32x128xf32>,
    %cst_37 = arith.constant 0.000000e+00 : f32
    %75 = vector.broadcast %cst_37 : f32 to vector<8x128xf32>
    %c32 = arith.constant 32 : index
    %c0_38 = arith.constant 0 : index
    %76 = vector.load %arg10[%c32, %c0_38] : memref<40x128xf32, #tpu.memory_space<vmem>>, vector<8x128xf32>
    tpu.vector_store %arg10[%c32, %c0_38], %75 {strides = array<i32>} : memref<40x128xf32, #tpu.memory_space<vmem>>, vector<8x128xf32>,
    %c0_39 = arith.constant 0 : index
    %c0_40 = arith.constant 0 : index
    %77 = vector.load %arg10[%c0_39, %c0_40] : memref<40x128xf32, #tpu.memory_space<vmem>>, vector<32x128xf32>
    %c0_41 = arith.constant 0 : index
    %c0_42 = arith.constant 0 : index
    %c0_43 = arith.constant 0 : index
    %78 = vector.load %arg2[%c0_41, %c0_42, %c0_43] : memref<3x128x128xf32, #tpu.memory_space<vmem>>, vector<1x128x128xf32>
    %79 = vector.shape_cast %78 : vector<1x128x128xf32> to vector<128x128xf32>
    %cst_44 = arith.constant dense<0.000000e+00> : vector<32x128xf32>
    %80 = tpu.matmul %77, %79, %cst_44 {dimension_numbers = #tpu.dot_dimension_numbers<[1], [0], [0], [1], [0, 0, 1, 1], [], []>} : vector<32x128xf32>, vector<128x128xf32>, vector<32x128xf32> -> vector<32x128xf32>
    %c1_45 = arith.constant 1 : index
    %c0_46 = arith.constant 0 : index
    %81 = vector.load %arg10[%c1_45, %c0_46] : memref<40x128xf32, #tpu.memory_space<vmem>>, vector<32x128xf32>
    %c1_47 = arith.constant 1 : index
    %c0_48 = arith.constant 0 : index
    %c0_49 = arith.constant 0 : index
    %82 = vector.load %arg2[%c1_47, %c0_48, %c0_49] : memref<3x128x128xf32, #tpu.memory_space<vmem>>, vector<1x128x128xf32>
    %83 = vector.shape_cast %82 : vector<1x128x128xf32> to vector<128x128xf32>
    %cst_50 = arith.constant dense<0.000000e+00> : vector<32x128xf32>
    %84 = tpu.matmul %81, %83, %cst_50 {dimension_numbers = #tpu.dot_dimension_numbers<[1], [0], [0], [1], [0, 0, 1, 1], [], []>} : vector<32x128xf32>, vector<128x128xf32>, vector<32x128xf32> -> vector<32x128xf32>
    %85 = arith.addf %80, %84 : vector<32x128xf32>
    %c2_51 = arith.constant 2 : index
    %c0_52 = arith.constant 0 : index
    %86 = vector.load %arg10[%c2_51, %c0_52] : memref<40x128xf32, #tpu.memory_space<vmem>>, vector<32x128xf32>
    %c2_53 = arith.constant 2 : index
    %c0_54 = arith.constant 0 : index
    %c0_55 = arith.constant 0 : index
    %87 = vector.load %arg2[%c2_53, %c0_54, %c0_55] : memref<3x128x128xf32, #tpu.memory_space<vmem>>, vector<1x128x128xf32>
    %88 = vector.shape_cast %87 : vector<1x128x128xf32> to vector<128x128xf32>
    %cst_56 = arith.constant dense<0.000000e+00> : vector<32x128xf32>
    %89 = tpu.matmul %86, %88, %cst_56 {dimension_numbers = #tpu.dot_dimension_numbers<[1], [0], [0], [1], [0, 0, 1, 1], [], []>} : vector<32x128xf32>, vector<128x128xf32>, vector<32x128xf32> -> vector<32x128xf32>
    %90 = arith.addf %85, %89 : vector<32x128xf32>
    %c12_i32 = arith.constant 12 : i32
    %91 = vector.broadcast %c12_i32 : i32 to vector<32x1xi32>
    %92 = arith.cmpi slt, %18, %91 : vector<32x1xi32>
    %cst_57 = arith.constant 0.000000e+00 : f32
    %93 = vector.shape_cast %92 : vector<32x1xi1> to vector<32x1xi1>
    %94 = vector.broadcast %93 : vector<32x1xi1> to vector<32x128xi1>
    %95 = vector.broadcast %cst_57 : f32 to vector<32x128xf32>
    %96 = arith.select %94, %90, %95 : vector<32x128xi1>, vector<32x128xf32>
    %cst_58 = arith.constant dense<0.000000e+00> : vector<128xf32>
    %97 = vector.multi_reduction <add>, %96, %cst_58 [0] : vector<32x128xf32> to vector<128xf32>
    %98 = vector.shape_cast %97 : vector<128xf32> to vector<1x128xf32>
    %99 = arith.mulf %96, %96 : vector<32x128xf32>
    %cst_59 = arith.constant dense<0.000000e+00> : vector<128xf32>
    %100 = vector.multi_reduction <add>, %99, %cst_59 [0] : vector<32x128xf32> to vector<128xf32>
    %101 = vector.shape_cast %100 : vector<128xf32> to vector<1x128xf32>
    %102 = tpu.concatenate %98, %101 in 0 : vector<1x128xf32>, vector<1x128xf32> -> vector<2x128xf32>
    %c0_60 = arith.constant 0 : index
    %c0_61 = arith.constant 0 : index
    %103 = vector.load %arg7[%c0_60, %c0_61] : memref<128x8xf32, #tpu.memory_space<vmem>>, vector<128x8xf32>
    %cst_62 = arith.constant dense<0.000000e+00> : vector<2x8xf32>
    %104 = tpu.matmul %102, %103, %cst_62 {dimension_numbers = #tpu.dot_dimension_numbers<[1], [0], [0], [1], [0, 0, 1, 1], [], []>} : vector<2x128xf32>, vector<128x8xf32>, vector<2x8xf32> -> vector<2x8xf32>
    %105 = vector.extract_strided_slice %104 {offsets = [0, 0], sizes = [1, 8], strides = [1, 1]} : vector<2x8xf32> to vector<1x8xf32>
    %cst_63 = arith.constant 0.00347222225 : f32
    %106 = vector.broadcast %cst_63 : f32 to vector<1x8xf32>
    %107 = arith.mulf %105, %106 : vector<1x8xf32>
    %108 = vector.extract_strided_slice %104 {offsets = [1, 0], sizes = [1, 8], strides = [1, 1]} : vector<2x8xf32> to vector<1x8xf32>
    %cst_64 = arith.constant 0.00347222225 : f32
    %109 = vector.broadcast %cst_64 : f32 to vector<1x8xf32>
    %110 = arith.mulf %108, %109 : vector<1x8xf32>
    %111 = arith.mulf %107, %107 : vector<1x8xf32>
    %112 = arith.subf %110, %111 : vector<1x8xf32>
    %cst_65 = arith.constant 0.000000e+00 : f32
    %113 = vector.broadcast %cst_65 : f32 to vector<1x8xf32>
    %114 = arith.maximumf %112, %113 : vector<1x8xf32>
    %cst_66 = arith.constant 9.99999974E-6 : f32
    %115 = vector.broadcast %cst_66 : f32 to vector<1x8xf32>
    %116 = arith.addf %114, %115 : vector<1x8xf32>
    %117 = math.rsqrt %116 : vector<1x8xf32>
    %118 = arith.mulf %0, %117 : vector<1x8xf32>
    %119 = arith.mulf %107, %118 : vector<1x8xf32>
    %120 = arith.subf %1, %119 : vector<1x8xf32>
    %121 = tpu.concatenate %118, %120 in 0 : vector<1x8xf32>, vector<1x8xf32> -> vector<2x8xf32>
    %c0_67 = arith.constant 0 : index
    %c0_68 = arith.constant 0 : index
    %122 = vector.load %arg8[%c0_67, %c0_68] : memref<8x128xf32, #tpu.memory_space<vmem>>, vector<8x128xf32>
    %cst_69 = arith.constant dense<0.000000e+00> : vector<2x128xf32>
    %123 = tpu.matmul %121, %122, %cst_69 {dimension_numbers = #tpu.dot_dimension_numbers<[1], [0], [0], [1], [0, 0, 1, 1], [], []>} : vector<2x8xf32>, vector<8x128xf32>, vector<2x128xf32> -> vector<2x128xf32>
    %124 = vector.extract_strided_slice %123 {offsets = [0, 0], sizes = [1, 128], strides = [1, 1]} : vector<2x128xf32> to vector<1x128xf32>
    %125 = vector.broadcast %124 : vector<1x128xf32> to vector<32x128xf32>
    %126 = arith.mulf %90, %125 : vector<32x128xf32>
    %127 = vector.extract_strided_slice %123 {offsets = [1, 0], sizes = [1, 128], strides = [1, 1]} : vector<2x128xf32> to vector<1x128xf32>
    %128 = vector.broadcast %127 : vector<1x128xf32> to vector<32x128xf32>
    %129 = arith.addf %126, %128 : vector<32x128xf32>
    %cst_70 = arith.constant 0.000000e+00 : f32
    %130 = vector.broadcast %cst_70 : f32 to vector<32x128xf32>
    %131 = arith.maximumf %129, %130 : vector<32x128xf32>
    %c0_71 = arith.constant 0 : index
    %c0_72 = arith.constant 0 : index
    %132 = vector.load %arg9[%c0_71, %c0_72] : memref<32x128xf32, #tpu.memory_space<vmem>>, vector<32x128xf32>
    tpu.vector_store %arg9[%c0_71, %c0_72], %131 {strides = array<i32>} : memref<32x128xf32, #tpu.memory_space<vmem>>, vector<32x128xf32>,
    return
  }
}

</mosaic_0001>

<bundles_post_ra>
// kernel: conv3dup_forward.1
= control target key start
LH: loop header
LB: loop body
LE: loop exit
PB: predicated region body
PF: predicated region fallthrough
CT: control target
= control target key end

     0   :  { %vm180_vm0 = vcmask 1046528   ;;  %vm418_vm1 = vcmask 1045504   ;;  %vm2159_vm2 = vmmov 0   ;;  %vm572_vm5 = vcmask 1040384   ;;  %s2973_s1 = inlined_call_operand.vmem [shape: f32[3,256,128], index: 1, kind: input, shape index: {}]   ;;  %s2974_s0 = inlined_call_operand.vmem [shape: f32[40,256], index: 0, kind: input, shape index: {}]   ;;  %s2975_s5 = inlined_call_operand.vmem [shape: f32[128,8], index: 5, kind: input, shape index: {}]   ;;  %s2976_s6 = inlined_call_operand.vmem [shape: f32[8,128], index: 6, kind: input, shape index: {}]   ;;  %s2977_s2 = inlined_call_operand.vmem [shape: f32[3,128,128], index: 2, kind: input, shape index: {}]   ;;  %s2978_s3 = inlined_call_operand.vmem [shape: f32[1,8], index: 3, kind: input, shape index: {}]   ;;  %s2979_s4 = inlined_call_operand.vmem [shape: f32[1,8], index: 4, kind: input, shape index: {}]   ;;  %s2980_s7 = inlined_call_operand.vmem [shape: f32[128,8], index: 7, kind: input, shape index: {}]   ;;  %s2981_s8 = inlined_call_operand.vmem [shape: f32[8,128], index: 8, kind: input, shape index: {}]   ;;  %s2982_s9 = inlined_call_operand.vmem [shape: f32[32,128], index: 9, kind: output, shape index: {}]  }
   0x1   :  { %v1396_v0 = vld [vmem:[%s2973_s1 + $0x180] sm:$0xff]  ;;  %v1397_v1 = vld [vmem:[%s2973_s1 + $0x188] sm:$0xff]  ;;  %v1398_v5 = vld [vmem:[%s2973_s1 + $0x190] sm:$0xff]  ;;  %vm697_vm6 = vcmask 64512  }
   0x2   :  { %v1380_v2 = vld [vmem:[%s2973_s1 + $0x100] sm:$0xff]  ;;  %v1902_v3 = vpack.c.bf16 %v1397_v1, %v1396_v0  ;;  %v1381_v4 = vld [vmem:[%s2973_s1 + $0x108] sm:$0xff]  ;;  %v1399_v6 = vld [vmem:[%s2973_s1 + $0x198] sm:$0xff] }
   0x3   :  { %v1904_v7 = vpack.c.bf16 %v1381_v4, %v1380_v2  ;;  %v1906_v8 = vpack.c.bf16 %v1399_v6, %v1398_v5  ;;  %v1382_v9 = vld [vmem:[%s2973_s1 + $0x110] sm:$0xff]  ;;  %v1383_v10 = vld [vmem:[%s2973_s1 + $0x118] sm:$0xff]  ;;  %v1400_v11 = vld [vmem:[%s2973_s1 + $0x1a0] sm:$0xff] }
   0x4   :  { %1903 = vmatprep.subr.bf16.mxu1 %v1902_v3  ;;  %v1401_v12 = vld [vmem:[%s2973_s1 + $0x1a8] sm:$0xff]  ;;  %v1908_v13 = vpack.c.bf16 %v1383_v10, %v1382_v9  ;;  %v1384_v15 = vld [vmem:[%s2973_s1 + $0x120] sm:$0xff]  ;;  %v1402_v17 = vld [vmem:[%s2973_s1 + $0x1b0] sm:$0xff] }
   0x5   :  { %1905 = vmatpush3.bf16.msra.mxu1 %v1904_v7  ;;  %v1910_v14 = vpack.c.bf16 %v1401_v12, %v1400_v11  ;;  %v1385_v16 = vld [vmem:[%s2973_s1 + $0x128] sm:$0xff]  ;;  %v1403_v18 = vld [vmem:[%s2973_s1 + $0x1b8] sm:$0xff]  ;;  %v1386_v21 = vld [vmem:[%s2973_s1 + $0x130] sm:$0xff] }
   0x6   :  { %1907 = vmatprep.subr.bf16.mxu1 %v1906_v8  ;;  %v1912_v19 = vpack.c.bf16 %v1385_v16, %v1384_v15  ;;  %v1914_v20 = vpack.c.bf16 %v1403_v18, %v1402_v17  ;;  %v1387_v22 = vld [vmem:[%s2973_s1 + $0x138] sm:$0xff]  ;;  %v1404_v23 = vld [vmem:[%s2973_s1 + $0x1c0] sm:$0xff]  ;;  %v1405_v24 = vld [vmem:[%s2973_s1 + $0x1c8] sm:$0xff] }
   0x7   :  { %v128_v25 = vld [vmem:[%s2974_s0 + $0x8] sm:$0xfe]  ;;  %v2272_v26 = vld [vmem:[%s2974_s0 + $0x18] sm:$0xff]  ;;  %v1916_v28 = vpack.c.bf16 %v1387_v22, %v1386_v21  ;;  %v1388_v29 = vld [vmem:[%s2973_s1 + $0x140] sm:$0xff]  ;;  %v1918_v32 = vpack.c.bf16 %v1405_v24, %v1404_v23 }
   0x8   :  { %v184_v27 = vrot.slane %v128_v25, 1  ;;  %v1389_v30 = vld [vmem:[%s2973_s1 + $0x148] sm:$0xff]  ;;  %v185_v31 = vrot.slane %v2272_v26, 1  ;;  %v1406_v33 = vld [vmem:[%s2973_s1 + $0x1d0] sm:$0xff]  ;;  %v1428_v34 = vld [vmem:[%s2973_s1 + $0x280] sm:$0xff] }
   0x9   :  { %1909 = vmatpush3.bf16.msra.mxu1 %v1908_v13  ;;  %v1429_v35 = vld [vmem:[%s2973_s1 + $0x288] sm:$0xff]  ;;  %v1407_v36 = vld [vmem:[%s2973_s1 + $0x1d8] sm:$0xff]  ;;  %v1412_v39 = vld [vmem:[%s2973_s1 + $0x200] sm:$0xff]  ;;  %v1920_v42 = vpack.c.bf16 %v1389_v30, %v1388_v29 }
   0xa   :  { %1911 = vmatprep.subr.bf16.mxu1 %v1910_v14  ;;  %v186_v37 = vsel %vm180_vm0, %v184_v27, %v185_v31  ;;  %v1966_v38 = vpack.c.bf16 %v1429_v35, %v1428_v34  ;;  %v1413_v40 = vld [vmem:[%s2973_s1 + $0x208] sm:$0xff]  ;;  %v1430_v43 = vld [vmem:[%s2973_s1 + $0x290] sm:$0xff]  ;;  %v1431_v44 = vld [vmem:[%s2973_s1 + $0x298] sm:$0xff]  ;;  %v1922_v46 = vpack.c.bf16 %v1407_v36, %v1406_v33 }
   0xb   :  { %271 = vmatprep.mubr.f32.mxu1 %v186_v37  ;;  %v1968_v41 = vpack.c.bf16 %v1413_v40, %v1412_v39  ;;  %v1414_v45 = vld [vmem:[%s2973_s1 + $0x210] sm:$0xff]  ;;  %v1391_v48 = vld [vmem:[%s2973_s1 + $0x158] sm:$0xff]  ;;  %v1970_v49 = vpack.c.bf16 %v1431_v44, %v1430_v43  ;;  %v1408_v51 = vld [vmem:[%s2973_s1 + $0x1e0] sm:$0xff] }
   0xc   :  { %1967 = vmatprep.subr.bf16.mxu0 %v1966_v38  ;;  %v1390_v47 = vld [vmem:[%s2973_s1 + $0x150] sm:$0xff]  ;;  %v1415_v50 = vld [vmem:[%s2973_s1 + $0x218] sm:$0xff]  ;;  %v1409_v52 = vld [vmem:[%s2973_s1 + $0x1e8] sm:$0xff] }
   0xd   :  { %1913 = vmatpush3.bf16.msra.mxu1 %v1912_v19  ;;  %1969 = vmatpush3.bf16.msra.mxu0 %v1968_v41  ;;  %v1972_v53 = vpack.c.bf16 %v1415_v50, %v1414_v45  ;;  %v1432_v54 = vld [vmem:[%s2973_s1 + $0x2a0] sm:$0xff]  ;;  %v1433_v55 = vld [vmem:[%s2973_s1 + $0x2a8] sm:$0xff]  ;;  %v1924_v58 = vpack.c.bf16 %v1391_v48, %v1390_v47  ;;  %v1926_v62 = vpack.c.bf16 %v1409_v52, %v1408_v51  ;;  %v1410_v63 = vld [vmem:[%s2973_s1 + $0x1f0] sm:$0xff] }
   0xe   :  { %1915 = vmatprep.subr.bf16.mxu1 %v1914_v20  ;;  %1971 = vmatprep.subr.bf16.mxu0 %v1970_v49  ;;  %v1416_v56 = vld [vmem:[%s2973_s1 + $0x220] sm:$0xff]  ;;  %v1417_v57 = vld [vmem:[%s2973_s1 + $0x228] sm:$0xff]  ;;  %v1974_v61 = vpack.c.bf16 %v1433_v55, %v1432_v54  ;;  %v1434_v1 = vld [vmem:[%s2973_s1 + $0x2b0] sm:$0xff] }
   0xf   :  { %v1392_v59 = vld [vmem:[%s2973_s1 + $0x160] sm:$0xff]  ;;  %v1393_v60 = vld [vmem:[%s2973_s1 + $0x168] sm:$0xff]  ;;  %v1976_v0 = vpack.c.bf16 %v1417_v57, %v1416_v56  ;;  %v1435_v2 = vld [vmem:[%s2973_s1 + $0x2b8] sm:$0xff] }
  0x10   :  { %v1411_v3 = vld [vmem:[%s2973_s1 + $0x1f8] sm:$0xff]  ;;  %v1978_v4 = vpack.c.bf16 %v1435_v2, %v1434_v1  ;;  %v1418_v5 = vld [vmem:[%s2973_s1 + $0x230] sm:$0xff]  ;;  %v1928_v9 = vpack.c.bf16 %v1393_v60, %v1392_v59  ;;  %v127_v10 = vld [vmem:[%s2974_s0] sm:$0xfe]  ;;  %v423_v60 = vrot.slane %v2272_v26, 2 }
  0x11   :  { %1917 = vmatpush3.bf16.msra.mxu1 %v1916_v28  ;;  %1973 = vmatpush3.bf16.msra.mxu0 %v1972_v53  ;;  %v1419_v6 = vld [vmem:[%s2973_s1 + $0x238] sm:$0xff]  ;;  %v1394_v7 = vld [vmem:[%s2973_s1 + $0x170] sm:$0xff]  ;;  %v1436_v11 = vld [vmem:[%s2973_s1 + $0x2c0] sm:$0xff]  ;;  %v1930_v13 = vpack.c.bf16 %v1411_v3, %v1410_v63  ;;  %v181_v25 = vrot.slane %v127_v10, 1 }
  0x12   :  { %1919 = vmatprep.subr.bf16.mxu1 %v1918_v32  ;;  %1975 = vmatprep.subr.bf16.mxu0 %v1974_v61  ;;  %v1395_v8 = vld [vmem:[%s2973_s1 + $0x178] sm:$0xff]  ;;  %v1437_v12 = vld [vmem:[%s2973_s1 + $0x2c8] sm:$0xff]  ;;  %v2380_v14 = vld [vmem:[%s2974_s0 + $0x10] sm:$0xff]  ;;  %v1980_v17 = vpack.c.bf16 %v1419_v6, %v1418_v5 }
  0x13   :  { %v111_v15 = vld [vmem:[%s2973_s1 + $0x80] sm:$0xff]  ;;  %v112_v16 = vld [vmem:[%s2973_s1 + $0x88] sm:$0xff]  ;;  %v1982_v18 = vpack.c.bf16 %v1437_v12, %v1436_v11  ;;  %v1438_v22 = vld [vmem:[%s2973_s1 + $0x2d0] sm:$0xff]  ;;  %v1932_v24 = vpack.c.bf16 %v1395_v8, %v1394_v7  ;;  %v182_v27 = vrot.slane %v2380_v14, 1 }
  0x14   :  { %v2391_v19 = vld [vmem:[%s2974_s0 + $0x28] sm:$0xff]  ;;  %v1420_v20 = vld [vmem:[%s2973_s1 + $0x240] sm:$0xff]  ;;  %v1439_v23 = vld [vmem:[%s2973_s1 + $0x2d8] sm:$0xff]  ;;  %v1934_v30 = vpack.c.bf16 %v112_v16, %v111_v15 }
  0x15   :  { %1921 = vmatpush3.bf16.msra.mxu1 %v1920_v42  ;;  %1977 = vmatpush3.bf16.msra.mxu0 %v1976_v0  ;;  %v1421_v21 = vld [vmem:[%s2973_s1 + $0x248] sm:$0xff]  ;;  %v95_v28 = vld [vmem:[%s2973_s1] sm:$0xff]  ;;  %v113_v32 = vld [vmem:[%s2973_s1 + $0x90] sm:$0xff]  ;;  %v189_v34 = vrot.slane %v2391_v19, 1  ;;  %v1986_v37 = vpack.c.bf16 %v1439_v23, %v1438_v22  ;;  %v183_v43 = vsel %vm180_vm0, %v181_v25, %v182_v27 }
  0x16   :  { %1923 = vmatprep.subr.bf16.mxu1 %v1922_v46  ;;  %1979 = vmatprep.subr.bf16.mxu0 %v1978_v4  ;;  %v96_v29 = vld [vmem:[%s2973_s1 + $0x8] sm:$0xff]  ;;  %v114_v33 = vld [vmem:[%s2973_s1 + $0x98] sm:$0xff]  ;;  %v1984_v35 = vpack.c.bf16 %v1421_v21, %v1420_v20  ;;  %v2422_v36 = vld [vmem:[%s2974_s0 + $0x20] sm:$0xff] }
  0x17   :  { %v2427_v38 = vld [vmem:[%s2974_s0 + $0x38] sm:$0xff]  ;;  %v1422_v39 = vld [vmem:[%s2973_s1 + $0x250] sm:$0xff]  ;;  %v1440_v41 = vld [vmem:[%s2973_s1 + $0x2e0] sm:$0xff]  ;;  %v1936_v44 = vpack.c.bf16 %v96_v29, %v95_v28  ;;  %v187_v47 = vrot.slane %v2422_v36, 1  ;;  %v1938_v48 = vpack.c.bf16 %v114_v33, %v113_v32  ;;  %v190_v51 = vsel %vm180_vm0, %v185_v31, %v189_v34 }
  0x18   :  { %v1423_v40 = vld [vmem:[%s2973_s1 + $0x258] sm:$0xff]  ;;  %v1441_v42 = vld [vmem:[%s2973_s1 + $0x2e8] sm:$0xff]  ;;  %v97_v45 = vld [vmem:[%s2973_s1 + $0x10] sm:$0xff]  ;;  %v193_v52 = vrot.slane %v2427_v38, 1  ;;  %v427_v32 = vrot.slane %v2391_v19, 2 }
  0x19   :  { %1925 = vmatpush3.bf16.msra.mxu1 %v1924_v58  ;;  %1981 = vmatpush3.bf16.msra.mxu0 %v1980_v17  ;;  %v98_v46 = vld [vmem:[%s2973_s1 + $0x18] sm:$0xff]  ;;  %v115_v49 = vld [vmem:[%s2973_s1 + $0xa0] sm:$0xff]  ;;  %v116_v50 = vld [vmem:[%s2973_s1 + $0xa8] sm:$0xff]  ;;  %v1988_v53 = vpack.c.bf16 %v1423_v40, %v1422_v39  ;;  %v1990_v55 = vpack.c.bf16 %v1441_v42, %v1440_v41  ;;  %v188_v0 = vsel %vm180_vm0, %v182_v27, %v187_v47 }
  0x1a   :  { %1927 = vmatprep.subr.bf16.mxu1 %v1926_v62  ;;  %1983 = vmatprep.subr.bf16.mxu0 %v1982_v18  ;;  %v2462_v54 = vld [vmem:[%s2974_s0 + $0x30] sm:$0xff]  ;;  %v136_v56 = vld [vmem:[%s2974_s0 + $0x48] sm:$0x1]  ;;  %v1424_v57 = vld [vmem:[%s2973_s1 + $0x260] sm:$0xff]  ;;  %v1940_v61 = vpack.c.bf16 %v98_v46, %v97_v45  ;;  %v1942_v62 = vpack.c.bf16 %v116_v50, %v115_v49  ;;  %v194_v5 = vsel %vm180_vm0, %v189_v34, %v193_v52  ;;  %v431_v46 = vrot.slane %v2427_v38, 2 }
  0x1b   :  { %v1425_v31 = vld [vmem:[%s2973_s1 + $0x268] sm:$0xff]  ;;  %v1442_v58 = vld [vmem:[%s2973_s1 + $0x2f0] sm:$0xff]  ;;  %v1443_v59 = vld [vmem:[%s2973_s1 + $0x2f8] sm:$0xff]  ;;  %v191_v1 = vrot.slane %v2462_v54, 1  ;;  %v197_v6 = vrot.slane %v136_v56, 1  ;;  %v428_v45 = vsel %vm418_vm1, %v423_v60, %v427_v32  ;;  %v429_v56 = vrot.slane %v2462_v54, 2 }
  0x1c   :  { %v99_v63 = vld [vmem:[%s2973_s1 + $0x20] sm:$0xff]  ;;  %v378_v2 = vld [vmem:[%s2974_s0 + $0x8] sm:$0xfc]  ;;  %v117_v4 = vld [vmem:[%s2973_s1 + $0xb0] sm:$0xff]  ;;  %v1992_v7 = vpack.c.bf16 %v1425_v31, %v1424_v57  ;;  %v1994_v11 = vpack.c.bf16 %v1443_v59, %v1442_v58  ;;  %v432_v57 = vsel %vm418_vm1, %v427_v32, %v431_v46 }
  0x1d   :  { %1929 = vmatpush3.bf16.msra.mxu1 %v1928_v9  ;;  %1985 = vmatpush3.bf16.msra.mxu0 %v1984_v35  ;;  %v100_v3 = vld [vmem:[%s2973_s1 + $0x28] sm:$0xff]  ;;  %v135_v8 = vld [vmem:[%s2974_s0 + $0x40] sm:$0x1]  ;;  %v422_v9 = vrot.slane %v378_v2, 2  ;;  %v118_v10 = vld [vmem:[%s2973_s1 + $0xb8] sm:$0xff]  ;;  %v192_v18 = vsel %vm180_vm0, %v187_v47, %v191_v1 }
  0x1e   :  { %1931 = vmatprep.subr.bf16.mxu1 %v1930_v13  ;;  %1987 = vmatprep.subr.bf16.mxu0 %v1986_v37  ;;  %v1426_v12 = vld [vmem:[%s2973_s1 + $0x270] sm:$0xff]  ;;  %v1427_v13 = vld [vmem:[%s2973_s1 + $0x278] sm:$0xff]  ;;  %v377_v16 = vld [vmem:[%s2974_s0] sm:$0xfc]  ;;  %v1944_v17 = vpack.c.bf16 %v100_v3, %v99_v63  ;;  %v195_v20 = vrot.slane %v135_v8, 1  ;;  %v1946_v21 = vpack.c.bf16 %v118_v10, %v117_v4 }
  0x1f   :  { %v424_v15 = vsel %vm418_vm1, %v422_v9, %v423_v60  ;;  %v101_v22 = vld [vmem:[%s2973_s1 + $0x30] sm:$0xff]  ;;  %v102_v23 = vld [vmem:[%s2973_s1 + $0x38] sm:$0xff]  ;;  %v1996_v25 = vpack.c.bf16 %v1427_v13, %v1426_v12  ;;  %v119_v27 = vld [vmem:[%s2973_s1 + $0xc0] sm:$0xff]  ;;  %v419_v29 = vrot.slane %v377_v16, 2 }
  0x20   :  { %v120_v28 = vld [vmem:[%s2973_s1 + $0xc8] sm:$0xff]  ;;  %509 = vmatprep.mubr.f32.mxu0 %v424_v15  ;;  %v1948_v33 = vpack.c.bf16 %v102_v23, %v101_v22  ;;  %v196_v34 = vsel %vm180_vm0, %v191_v1, %v195_v20  ;;  %v103_v37 = vld [vmem:[%s2973_s1 + $0x40] sm:$0xff]  ;;  %v121_v41 = vld [vmem:[%s2973_s1 + $0xd0] sm:$0xff] }
  0x21   :  { %1933 = vmatpush3.bf16.msra.mxu1 %v1932_v24  ;;  %1989 = vmatpush3.bf16.msra.mxu0 %v1988_v53  ;;  %v198_v24 = vsel %vm180_vm0, %v193_v52, %v197_v6  ;;  %v1950_v35 = vpack.c.bf16 %v120_v28, %v119_v27  ;;  %v104_v39 = vld [vmem:[%s2973_s1 + $0x48] sm:$0xff]  ;;  %v122_v42 = vld [vmem:[%s2973_s1 + $0xd8] sm:$0xff]  ;;  %v105_v50 = vld [vmem:[%s2973_s1 + $0x50] sm:$0xff] }
  0x22   :  { %1935 = vmatprep.subr.bf16.mxu1 %v1934_v30  ;;  %1991 = vmatprep.subr.bf16.mxu0 %v1990_v55  ;;  %v420_v30 = vrot.slane %v2380_v14, 2  ;;  %v88_v40 = vld [vmem:[%s2974_s0 + $0x8] sm:$0xff]  ;;  %v1952_v47 = vpack.c.bf16 %v104_v39, %v103_v37  ;;  %v1954_v49 = vpack.c.bf16 %v122_v42, %v121_v41  ;;  %v123_v52 = vld [vmem:[%s2973_s1 + $0xe0] sm:$0xff]  ;;  %v125_v63 = vld [vmem:[%s2973_s1 + $0xf0] sm:$0xff] }
  0x23   :  { %v124_v53 = vld [vmem:[%s2973_s1 + $0xe8] sm:$0xff]  ;;  %v379_v58 = vld [vmem:[%s2974_s0 + $0x40] sm:$0x3]  ;;  %v109_v6 = vld [vmem:[%s2973_s1 + $0x70] sm:$0xff] }
  0x24   :  { %272 = vmatmul.mubr.f32.vlgmr.msra.gmra.mrb[0].mxu1 %v183_v43  ;;  %v421_v43 = vsel %vm418_vm1, %v419_v29, %v420_v30  ;;  %v1958_v60 = vpack.c.bf16 %v124_v53, %v123_v52  ;;  %v433_v2 = vrot.slane %v379_v58, 2  ;;  %v87_v10 = vld [vmem:[%s2974_s0] sm:$0xff]  ;;  %v575_v12 = vld [vmem:[%s2975_s5 + $0x8] sm:$0xff]  ;;  %v580_v16 = vld [vmem:[%s2975_s5 + $0x30] sm:$0xff]  ;;  %v34_v58 = vlaneseq }
  0x25   :  { %1937 = vmatpush3.bf16.msra.mxu1 %v1936_v44  ;;  %276 = vmatprep.mubr.f32.mxu1 %v190_v51  ;;  %v425_v44 = vrot.slane %v2422_v36, 2  ;;  %v106_v51 = vld [vmem:[%s2973_s1 + $0x58] sm:$0xff]  ;;  %v582_v20 = vld [vmem:[%s2975_s5 + $0x40] sm:$0xff]  ;;  %v584_v23 = vld [vmem:[%s2975_s5 + $0x50] sm:$0xff] }
  0x26   :  { %1939 = vmatprep.subr.bf16.mxu1 %v1938_v48  ;;  %1993 = vmatpush3.bf16.msra.mxu0 %v1992_v7  ;;  %v380_v48 = vld [vmem:[%s2974_s0 + $0x48] sm:$0x3]  ;;  %v1956_v59 = vpack.c.bf16 %v106_v51, %v105_v50  ;;  %v110_v7 = vld [vmem:[%s2973_s1 + $0x78] sm:$0xff]  ;;  %v434_v8 = vsel %vm418_vm1, %v429_v56, %v433_v2  ;;  %v586_v27 = vld [vmem:[%s2975_s5 + $0x60] sm:$0xff] }
  0x27   :  { %1995 = vmatprep.subr.bf16.mxu0 %v1994_v11  ;;  %v426_v55 = vsel %vm418_vm1, %v420_v30, %v425_v44  ;;  %v435_v31 = vrot.slane %v380_v48, 2  ;;  %v430_v1 = vsel %vm418_vm1, %v425_v44, %v429_v56  ;;  %v1964_v9 = vpack.c.bf16 %v110_v7, %v109_v6  ;;  %v574_v11 = vld [vmem:[%s2975_s5] sm:$0xff]  ;;  %v587_v28 = vld [vmem:[%s2975_s5 + $0x68] sm:$0xff]  ;;  %v588_v30 = vld [vmem:[%s2975_s5 + $0x70] sm:$0xff] }
  0x28   :  { %277 = vmatmul.mubr.f32.gmra.mrb[2].mxu1 %v188_v0  ;;  %v126_v0 = vld [vmem:[%s2973_s1 + $0xf8] sm:$0xff]  ;;  %v1999_v13 = vpack.c.bf16 %v575_v12, %v574_v11  ;;  %v2017_v29 = vpack.c.bf16 %v587_v28, %v586_v27 }
  0x29   :  { %1941 = vmatpush3.bf16.msra.mxu1 %v1940_v61  ;;  %281 = vmatprep.mubr.f32.mxu1 %v194_v5  ;;  %v107_v61 = vld [vmem:[%s2973_s1 + $0x60] sm:$0xff]  ;;  %v436_v3 = vsel %vm418_vm1, %v431_v46, %v435_v31  ;;  %v1962_v5 = vpack.c.bf16 %v126_v0, %v125_v63  ;;  %v589_v32 = vld [vmem:[%s2975_s5 + $0x78] sm:$0xff] }
  0x2a   :  { %1943 = vmatprep.subr.bf16.mxu1 %v1942_v62  ;;  %1997 = vmatpush3.bf16.msra.mxu0 %v1996_v25  ;;  %v108_v62 = vld [vmem:[%s2973_s1 + $0x68] sm:$0xff] }
  0x2b   :  { %v1960_v4 = vpack.c.bf16 %v108_v62, %v107_v61  ;;  %v2658_v62 = vshrl.u32 %v34_v58, 7  ;;  %v1450_v58 = vld [vmem:[%s2977_s2 + $0xa8] sm:$0xff] }
  0x2c   :  { %282 = vmatmul.mubr.f32.gmra.mrb[4].mxu1 %v192_v18 }
  0x2d   :  { %1945 = vmatpush3.bf16.msra.mxu1 %v1944_v17  ;;  %286 = vmatprep.mubr.f32.mxu1 %v198_v24  ;;  %v581_v17 = vld [vmem:[%s2975_s5 + $0x38] sm:$0xff]  ;;  %v2669_v12 = vadd.s32 24, %v2658_v62 }
  0x2e   :  { %1947 = vmatprep.subr.bf16.mxu1 %v1946_v21  ;;  %510 = vmatmul.mubr.f32.vlgmr.msra.gmra.mrb[0].mxu0 %v421_v43  ;;  %v2008_v18 = vpack.c.bf16 %v581_v17, %v580_v16  ;;  %v583_v21 = vld [vmem:[%s2975_s5 + $0x48] sm:$0xff]  ;;  %v585_v24 = vld [vmem:[%s2975_s5 + $0x58] sm:$0xff] }
  0x2f   :  { %514 = vmatprep.mubr.f32.mxu0 %v428_v45  ;;  %v2011_v22 = vpack.c.bf16 %v583_v21, %v582_v20  ;;  %v2014_v25 = vpack.c.bf16 %v585_v24, %v584_v23  ;;  %v64_v16 = vand.u32 15, %v2669_v12 }
  0x30   :  { %287 = vmatmul.mubr.f32.gmra.mrb[6].mxu1 %v196_v34  ;;  %v2160_v34 = vmov 0.0  }
  0x31   :  { %1949 = vmatpush3.bf16.msra.mxu1 %v1948_v33  ;;  %356 = vmatprep.mubr.f32.mxu1 %v88_v40  ;;  %v2020_v33 = vpack.c.bf16 %v589_v32, %v588_v30  ;;  %795 = vst [vmem:[#allocation2 + $0x20] sm:$0xff] %v2160_v34  ;;  %vm537_vm4 = vcmp.lt.s32.totalorder %v64_v16, 14  ;;  %vm1120_vm8 = vcmp.lt.s32.totalorder %v64_v16, 12 }
  0x32   :  { %1951 = vmatprep.subr.bf16.mxu1 %v1950_v35  ;;  %515 = vmatmul.mubr.f32.gmra.mrb[2].mxu0 %v426_v55 }
  0x33   :  { %519 = vmatprep.mubr.f32.mxu0 %v432_v57 }
  0x35   :  { %1953 = vmatpush3.bf16.msra.mxu1 %v1952_v47 }
  0x36   :  { %1955 = vmatprep.subr.bf16.mxu1 %v1954_v49  ;;  %520 = vmatmul.mubr.f32.gmra.mrb[4].mxu0 %v430_v1  ;;  %v2661_v1 = vadd.s32 8, %v2658_v62 }
  0x37   :  { %524 = vmatprep.mubr.f32.mxu0 %v436_v3 }
  0x38   :  { %v50_v6 = vand.u32 15, %v2661_v1 }
  0x39   :  { %1957 = vmatpush3.bf16.msra.mxu1 %v1956_v59 }
  0x3a   :  { %1959 = vmatprep.subr.bf16.mxu1 %v1958_v60  ;;  %525 = vmatmul.mubr.f32.gmra.mrb[6].mxu0 %v434_v8  ;;  %vm535_vm3 = vcmp.lt.s32.totalorder %v50_v6, 14  ;;  %vm1118_vm7 = vcmp.lt.s32.totalorder %v50_v6, 12 }
  0x3d   :  { %1961 = vmatpush3.bf16.msra.mxu1 %v1960_v4 }
  0x3e   :  { %1963 = vmatprep.subr.bf16.mxu1 %v1962_v5 }
  0x41   :  { %1965 = vmatpush3.bf16.msra.mxu1 %v1964_v9 }
  0x44   :  { %357 = vmatmul.mubr.f32.vlgmr.msra.gmra.mrb[8].mxu1 %v87_v10 }
  0x45   :  { %361 = vmatprep.mubr.f32.mxu1 %v2272_v26  ;;  %v2158_v26 = vmov 0.0|0.0  }
  0x46   :  { %1998 = vmatprep.subr.bf16.mxu1 %v2158_v26 }
  0x47   :  { %2000 = vmatpush3.bf16.msra.mxu1 %v1999_v13 }
  0x48   :  { %362 = vmatmul.mubr.f32.gmra.mrb[10].mxu1 %v2380_v14  ;;  %2001 = vmatprep.subr.bf16.mxu1 %v2158_v26  ;;  %v576_v14 = vld [vmem:[%s2975_s5 + $0x10] sm:$0xff] }
  0x49   :  { %366 = vmatprep.mubr.f32.mxu1 %v2391_v19  ;;  %v577_v19 = vld [vmem:[%s2975_s5 + $0x18] sm:$0xff] }
  0x4c   :  { %367 = vmatmul.mubr.f32.gmra.mrb[12].mxu1 %v2422_v36  ;;  %v2002_v36 = vpack.c.bf16 %v577_v19, %v576_v14 }
  0x4d   :  { %371 = vmatprep.mubr.f32.mxu1 %v2427_v38  ;;  %v578_v38 = vld [vmem:[%s2975_s5 + $0x20] sm:$0xff] }
  0x4e   :  { %2003 = vmatpush3.bf16.msra.mxu1 %v2002_v36 }
  0x4f   :  { %2004 = vmatprep.subr.bf16.mxu1 %v2158_v26 }
  0x50   :  { %372 = vmatmul.mubr.f32.gmra.mrb[14].mxu1 %v2462_v54  ;;  %v579_v54 = vld [vmem:[%s2975_s5 + $0x28] sm:$0xff] }
  0x51   :  { %v2005_v15 = vpack.c.bf16 %v579_v54, %v578_v38  ;;  %1740 = vmatprep.mubr.msk.f32.mxu1 %vm2159_vm2, %v2160_v34 }
  0x53   :  { %2006 = vmatpush3.bf16.msra.mxu1 %v2005_v15 }
  0x54   :  { %2007 = vmatprep.subr.bf16.mxu1 %v2158_v26 }
  0x57   :  { %2009 = vmatpush3.bf16.msra.mxu1 %v2008_v18 }
  0x58   :  { %2010 = vmatprep.subr.bf16.mxu1 %v2158_v26 }
  0x5b   :  { %2012 = vmatpush3.bf16.msra.mxu1 %v2011_v22 }
  0x5c   :  { %2013 = vmatprep.subr.bf16.mxu1 %v2158_v26 }
  0x5f   :  { %2015 = vmatpush3.bf16.msra.mxu1 %v2014_v25 }
  0x60   :  { %2016 = vmatprep.subr.bf16.mxu1 %v2158_v26 }
  0x63   :  { %2018 = vmatpush3.bf16.msra.mxu1 %v2017_v29 }
  0x64   :  { %2019 = vmatprep.subr.bf16.mxu1 %v2158_v26 }
  0x67   :  { %2021 = vmatpush3.bf16.msra.mxu1 %v2020_v33 }
  0x68   :  { %1743 = vmatprep.subr.mxu1 %v2160_v34 }
  0xf7   :  { %v1510_v35 = vpop.f32.mrb[0].mxu1 }
  0xf8   :  { %v1511_v37 = vpop.f32.mrb[1].mxu1 }
  0xf9   :  { %v1512_v39 = vadd.f32 %v1511_v37, %v1510_v35 }
  0xfb   :  { %v1513_v40 = vpop.f32.mrb[2].mxu1 }
  0xfc   :  { %v1514_v41 = vpop.f32.mrb[3].mxu1 }
  0xfd   :  { %v1515_v42 = vadd.f32 %v1514_v41, %v1513_v40 }
  0xff   :  { %v1516_v43 = vpop.f32.mrb[4].mxu1 }
 0x100   :  { %v1517_v44 = vpop.f32.mrb[5].mxu1 }
 0x101   :  { %v1518_v45 = vadd.f32 %v1517_v44, %v1516_v43  ;;  %v1598_v49 = vpop.f32.mrb[0].mxu0 }
 0x102   :  { %v1599_v50 = vpop.f32.mrb[1].mxu0 }
 0x103   :  { %v1519_v46 = vpop.f32.mrb[6].mxu1  ;;  %v1600_v51 = vadd.f32 %v1599_v50, %v1598_v49  ;;  %v696_v50 = vld [vmem:[%s2976_s6] sm:$0xff] }
 0x104   :  { %v1520_v47 = vpop.f32.mrb[7].mxu1 }
 0x105   :  { %v1521_v48 = vadd.f32 %v1520_v47, %v1519_v46  ;;  %v1601_v52 = vpop.f32.mrb[2].mxu0 }
 0x106   :  { %v1602_v53 = vpop.f32.mrb[3].mxu0 }
 0x107   :  { %v1603_v55 = vadd.f32 %v1602_v53, %v1601_v52  ;;  %v1446_v52 = vld [vmem:[%s2977_s2 + $0x88] sm:$0xff]  ;;  %v1447_v53 = vld [vmem:[%s2977_s2 + $0x90] sm:$0xff] }
 0x109   :  { %v1604_v56 = vpop.f32.mrb[4].mxu0 }
 0x10a   :  { %v1605_v57 = vpop.f32.mrb[5].mxu0 }
 0x10b   :  { %v1606_v31 = vadd.f32 %v1605_v57, %v1604_v56  ;;  %v1448_v56 = vld [vmem:[%s2977_s2 + $0x98] sm:$0xff] }
 0x10c   :  { %v2026_v57 = vpack.c.bf16 %v1448_v56, %v1447_v53  ;;  %v1159_v53 = vld [vmem:[%s2980_s7 + $0x18] sm:$0xff]  ;;  %v781_v56 = vsub.s32 1, %v2658_v62 }
 0x10d   :  { %v1607_v59 = vpop.f32.mrb[6].mxu0 }
 0x10e   :  { %v1608_v60 = vpop.f32.mrb[7].mxu0 }
 0x10f   :  { %v1609_v61 = vadd.f32 %v1608_v60, %v1607_v59  ;;  %v1451_v60 = vld [vmem:[%s2977_s2 + $0xb0] sm:$0xff] }
 0x117   :  { %v1554_v63 = vpop.f32.mrb[8].mxu1 }
 0x118   :  { %v1555_v0 = vpop.f32.mrb[9].mxu1 }
 0x119   :  { %v1556_v2 = vadd.f32 %v1555_v0, %v1554_v63 }
 0x11b   :  { %v359_v3 = vadd.f32 %v1556_v2, %v1512_v39  ;;  %v1557_v4 = vpop.f32.mrb[10].mxu1 }
 0x11c   :  { %v1558_v5 = vpop.f32.mrb[11].mxu1 }
 0x11d   :  { %v2664_v7 = vadd.f32 %v1600_v51, %v359_v3  ;;  %v1559_v8 = vadd.f32 %v1558_v5, %v1557_v4  ;;  %v1445_v51 = vld [vmem:[%s2977_s2 + $0x80] sm:$0xff] }
 0x11f   :  { %v364_v9 = vadd.f32 %v1559_v8, %v1515_v42  ;;  %v1560_v10 = vpop.f32.mrb[12].mxu1  ;;  %v559_v20 = vmul.f32 %v2664_v7, %v2664_v7 }
 0x120   :  { %v1561_v11 = vpop.f32.mrb[13].mxu1 }
 0x121   :  { %v2671_v13 = vadd.f32 %v1603_v55, %v364_v9  ;;  %v1562_v14 = vadd.f32 %v1561_v11, %v1560_v10  ;;  %v2022_v55 = vpack.c.bf16 %v1446_v52, %v1445_v51  ;;  %v2161_v11 = vmov 1966171168   ;;  %v1158_v51 = vld [vmem:[%s2980_s7 + $0x10] sm:$0xff] }
 0x123   :  { %v547_v19 = vsel %vm535_vm3, %v2671_v13, 0.0  ;;  %v369_v36 = vadd.f32 %v1562_v14, %v1518_v45  ;;  %v1563_v38 = vpop.f32.mrb[14].mxu1  ;;  %2023 = vmatprep.subr.bf16.mxu0 %v2022_v55  ;;  %v671_v14 = vunpack.c.l.s4 %v2161_v11 }
 0x124   :  { %v560_v54 = vmul.f32 %v547_v19, %v547_v19  ;;  %v1564_v15 = vpop.f32.mrb[15].mxu1  ;;  %v550_v21 = vadd.f32 %v547_v19, %v2664_v7  ;;  %2025 = vmatpush3.bf16.msra.mxu0 %v2022_v55  ;;  %v2122_v55 = vpack.c.bf16 %v1159_v53, %v1158_v51  ;;  %v1466_v51 = vld [vmem:[%s2977_s2 + $0x128] sm:$0xff]  ;;  %v1467_v53 = vld [vmem:[%s2977_s2 + $0x130] sm:$0xff] }
 0x125   :  { %v2675_v17 = vadd.f32 %v1606_v31, %v369_v36  ;;  %v1565_v18 = vadd.f32 %v1564_v15, %v1563_v38  ;;  %v1449_v31 = vld [vmem:[%s2977_s2 + $0xa0] sm:$0xff]  ;;  %2027 = vmatprep.subr.bf16.mxu0 %v2026_v57  ;;  %v672_v19 = vunpack.c.0.s8 %v671_v14 }
 0x126   :  { %v563_v23 = vadd.f32 %v560_v54, %v559_v20  ;;  %v2030_v59 = vpack.c.bf16 %v1450_v58, %v1449_v31 }
 0x127   :  { %v374_v22 = vadd.f32 %v1565_v18, %v1521_v48  ;;  %v561_v24 = vmul.f32 %v2675_v17, %v2675_v17  ;;  %v551_v27 = vadd.f32 %v550_v21, %v2675_v17  ;;  %v2720_v36 = vsub.s32 %v672_v19, %v2658_v62  ;;  %v2726_v18 = vld [vmem:[%s2978_s3] sm:$0x1] }
 0x128   :  { %2029 = vmatpush3.bf16.msra.mxu0 %v2026_v57  ;;  %v804_v19 = vld [vmem:[%s2977_s2 + $0x20] sm:$0xff] }
 0x129   :  { %v2684_v25 = vadd.f32 %v1609_v61, %v374_v22  ;;  %v564_v29 = vadd.f32 %v563_v23, %v561_v24  ;;  %v1452_v61 = vld [vmem:[%s2977_s2 + $0xb8] sm:$0xff]  ;;  %2031 = vmatprep.subr.bf16.mxu0 %v2030_v59  ;;  %v2733_v22 = vld [vmem:[%s2979_s4] sm:$0x1]  ;;  %v2736_v24 = vsub.s32 0, %v2658_v62 }
 0x12a   :  { %v2034_v63 = vpack.c.bf16 %v1452_v61, %v1451_v60 }
 0x12b   :  { %v549_v28 = vsel %vm537_vm4, %v2684_v25, 0.0 }
 0x12c   :  { %v552_v30 = vadd.f32 %v551_v27, %v549_v28  ;;  %v562_v32 = vmul.f32 %v549_v28, %v549_v28  ;;  %2033 = vmatpush3.bf16.msra.mxu0 %v2030_v59 }
 0x12d   :  { %2035 = vmatprep.subr.bf16.mxu0 %v2034_v63 }
 0x12e   :  { %v553_v33 = vrot.slane %v552_v30, 4  ;;  %v565_v35 = vadd.f32 %v564_v29, %v562_v32  ;;  %v1454_v32 = vld [vmem:[%s2977_s2 + $0xc8] sm:$0xff] }
 0x130   :  { %v554_v37 = vadd.f32 %v553_v33, %v552_v30  ;;  %v566_v39 = vrot.slane %v565_v35, 4  ;;  %2037 = vmatpush3.bf16.msra.mxu0 %v2034_v63  ;;  %v1453_v30 = vld [vmem:[%s2977_s2 + $0xc0] sm:$0xff] }
 0x131   :  { %v2038_v33 = vpack.c.bf16 %v1454_v32, %v1453_v30  ;;  %v810_v32 = vld [vmem:[%s2977_s2 + $0x50] sm:$0xff] }
 0x132   :  { %v555_v40 = vrot.slane %v554_v37, 2  ;;  %v567_v41 = vadd.f32 %v566_v39, %v565_v35  ;;  %v1455_v35 = vld [vmem:[%s2977_s2 + $0xd0] sm:$0xff] }
 0x133   :  { %2039 = vmatprep.subr.bf16.mxu0 %v2038_v33 }
 0x134   :  { %v556_v42 = vadd.f32 %v555_v40, %v554_v37  ;;  %v568_v43 = vrot.slane %v567_v41, 2  ;;  %2041 = vmatpush3.bf16.msra.mxu0 %v2038_v33  ;;  %v1456_v37 = vld [vmem:[%s2977_s2 + $0xd8] sm:$0xff]  ;;  %v1457_v40 = vld [vmem:[%s2977_s2 + $0xe0] sm:$0xff] }
 0x135   :  { %v2042_v39 = vpack.c.bf16 %v1456_v37, %v1455_v35  ;;  %v811_v33 = vld [vmem:[%s2977_s2 + $0x58] sm:$0xff]  ;;  %v812_v37 = vld [vmem:[%s2977_s2 + $0x60] sm:$0xff] }
 0x136   :  { %v557_v44 = vrot.slane %v556_v42, 1  ;;  %v569_v45 = vadd.f32 %v568_v43, %v567_v41  ;;  %v1458_v41 = vld [vmem:[%s2977_s2 + $0xe8] sm:$0xff]  ;;  %v1459_v43 = vld [vmem:[%s2977_s2 + $0xf0] sm:$0xff]  ;;  %v2074_v35 = vpack.c.bf16 %v811_v33, %v810_v32  ;;  %v1171_v33 = vld [vmem:[%s2980_s7 + $0x78] sm:$0xff] }
 0x137   :  { %2043 = vmatprep.subr.bf16.mxu0 %v2042_v39  ;;  %v1170_v32 = vld [vmem:[%s2980_s7 + $0x70] sm:$0xff] }
 0x138   :  { %v570_v46 = vrot.slane %v569_v45, 1  ;;  %v558_v47 = vadd.f32 %v557_v44, %v556_v42  ;;  %2045 = vmatpush3.bf16.msra.mxu0 %v2042_v39  ;;  %v2046_v42 = vpack.c.bf16 %v1458_v41, %v1457_v40  ;;  %v1460_v44 = vld [vmem:[%s2977_s2 + $0xf8] sm:$0xff]  ;;  %v813_v39 = vld [vmem:[%s2977_s2 + $0x68] sm:$0xff]  ;;  %v814_v41 = vld [vmem:[%s2977_s2 + $0x70] sm:$0xff] }
 0x139   :  { %v2078_v40 = vpack.c.bf16 %v813_v39, %v812_v37 }
 0x13a   :  { %v571_v48 = vadd.f32 %v570_v46, %v569_v45  ;;  %2047 = vmatprep.subr.bf16.mxu0 %v2046_v42  ;;  %v2050_v45 = vpack.c.bf16 %v1460_v44, %v1459_v43  ;;  %v800_v46 = vld [vmem:[%s2977_s2] sm:$0xff] }
 0x13b   :  { %v1461_v44 = vld [vmem:[%s2977_s2 + $0x100] sm:$0xff] }
 0x13c   :  { %v573_v49 = vsel %vm572_vm5, %v558_v47, %v571_v48  ;;  %2049 = vmatpush3.bf16.msra.mxu0 %v2046_v42  ;;  %v801_v47 = vld [vmem:[%s2977_s2 + $0x8] sm:$0xff]  ;;  %v815_v42 = vld [vmem:[%s2977_s2 + $0x78] sm:$0xff] }
 0x13d   :  { %1741 = vmatmul.mubr.f32.vlgmr.msra.gmra.mrb[16].mxu1 %v573_v49  ;;  %2051 = vmatprep.subr.bf16.mxu0 %v2050_v45  ;;  %v2054_v48 = vpack.c.bf16 %v801_v47, %v800_v46  ;;  %v1156_v49 = vld [vmem:[%s2980_s7] sm:$0xff]  ;;  %v2082_v43 = vpack.c.bf16 %v815_v42, %v814_v41  ;;  %v1463_v47 = vld [vmem:[%s2977_s2 + $0x110] sm:$0xff] }
 0x13e   :  { %1745 = vmatprep.mubr.msk.f32.mxu1 %vm2159_vm2, %v2160_v34  ;;  %1744 = vmatpush3.msra.mxu1 %v696_v50  ;;  %v1157_v50 = vld [vmem:[%s2980_s7 + $0x8] sm:$0xff] }
 0x13f   :  { %2118 = vmatprep.subr.bf16.mxu1 %v2158_v26  ;;  %v2119_v52 = vpack.c.bf16 %v1157_v50, %v1156_v49  ;;  %v1465_v50 = vld [vmem:[%s2977_s2 + $0x120] sm:$0xff] }
 0x140   :  { %2053 = vmatpush3.bf16.msra.mxu0 %v2050_v45  ;;  %v1462_v45 = vld [vmem:[%s2977_s2 + $0x108] sm:$0xff] }
 0x141   :  { %2055 = vmatprep.subr.bf16.mxu0 %v2054_v48  ;;  %v2086_v46 = vpack.c.bf16 %v1462_v45, %v1461_v44 }
 0x210   :  { %v656_v0 = vpop.f32.mrb[16].mxu1 }
 0x211   :  { %v660_v2 = vmul.f32 0.0025510204, %v656_v0  ;;  %v1742_v3 = vpop.f32.mrb[17].mxu1 }
 0x213   :  { %v661_v4 = vmul.f32 %v660_v2, %v660_v2 }
 0x215   :  { %v663_v5 = vrot.slane %v661_v4, 7 }
 0x217   :  { %v665_v8 = vsub.f32 %v660_v2, %v663_v5 }
 0x219   :  { %v666_v9 = vmax.f32 %v665_v8, 0.0 }
 0x21b   :  { %v667_v10 = vadd.f32 1e-05, %v666_v9 }
 0x21d   :  { %2154 = vrsqrt.f32 %v667_v10 }
 0x227   :  { %v2155_v38 = vpop.eup %2154 }
 0x228   :  { %v676_v54 = vrot.slane %v2155_v38, %v2720_v36  ;;  %v805_v38 = vld [vmem:[%s2977_s2 + $0x28] sm:$0xff] }
 0x22a   :  { %v677_v15 = vcombine.high %v676_v54, %v676_v54 }
 0x22c   :  { %v684_v20 = vrot.slane %v677_v15, %v2720_v36  ;;  %v2062_v15 = vpack.c.bf16 %v805_v38, %v804_v19  ;;  %v1163_v19 = vld [vmem:[%s2980_s7 + $0x38] sm:$0xff] }
 0x22e   :  { %v686_v21 = vmul.f32 %v684_v20, %v2726_v18 }
 0x230   :  { %v687_v23 = vmul.f32 %v686_v21, %v660_v2 }
 0x232   :  { %v688_v27 = vsub.f32 %v2733_v22, %v687_v23  ;;  %v807_v23 = vld [vmem:[%s2977_s2 + $0x38] sm:$0xff] }
 0x234   :  { %v693_v28 = vrot.slane %v688_v27, %v2736_v24 }
 0x236   :  { %v695_v29 = vsel %vm572_vm5, %v686_v21, %v693_v28  ;;  %v806_v21 = vld [vmem:[%s2977_s2 + $0x30] sm:$0xff]  ;;  %v808_v28 = vld [vmem:[%s2977_s2 + $0x40] sm:$0xff] }
 0x237   :  { %1746 = vmatmul.mubr.msk.f32.vlgmr.msra.gmra.mrb[18].mxu1 %vm697_vm6, %v695_v29  ;;  %v2066_v27 = vpack.c.bf16 %v807_v23, %v806_v21  ;;  %v809_v29 = vld [vmem:[%s2977_s2 + $0x48] sm:$0xff]  ;;  %v1166_v21 = vld [vmem:[%s2980_s7 + $0x50] sm:$0xff]  ;;  %v1167_v23 = vld [vmem:[%s2980_s7 + $0x58] sm:$0xff] }
 0x238   :  { %1894 = vmatprep.mubr.msk.f32.mxu1 %vm2159_vm2, %v2160_v34  ;;  %2120 = vmatpush3.bf16.msra.mxu1 %v2119_v52  ;;  %v2070_v30 = vpack.c.bf16 %v809_v29, %v808_v28  ;;  %v2094_v52 = vpack.c.bf16 %v1466_v51, %v1465_v50  ;;  %v1168_v28 = vld [vmem:[%s2980_s7 + $0x60] sm:$0xff]  ;;  %v1169_v29 = vld [vmem:[%s2980_s7 + $0x68] sm:$0xff] }
 0x239   :  { %2121 = vmatprep.subr.bf16.mxu1 %v2158_v26 }
 0x23c   :  { %2123 = vmatpush3.bf16.msra.mxu1 %v2122_v55  ;;  %v1468_v55 = vld [vmem:[%s2977_s2 + $0x138] sm:$0xff] }
 0x23d   :  { %2124 = vmatprep.subr.bf16.mxu1 %v2158_v26 }
 0x30a   :  { %v767_v57 = vpop.f32.mrb[18].mxu1 }
 0x30b   :  { %v774_v31 = vrot.slane %v767_v57, %v2736_v24  ;;  %v1747_v58 = vpop.f32.mrb[19].mxu1  ;;  %v782_v59 = vrot.slane %v767_v57, %v781_v56 }
 0x30c   :  { %v1469_v58 = vld [vmem:[%s2977_s2 + $0x140] sm:$0xff] }
 0x30d   :  { %v775_v60 = vmul.f32 %v774_v31, %v2664_v7  ;;  %v776_v61 = vmul.f32 %v774_v31, %v2671_v13  ;;  %v777_v63 = vmul.f32 %v774_v31, %v2675_v17  ;;  %v778_v0 = vmul.f32 %v774_v31, %v2684_v25  ;;  %v802_v13 = vld [vmem:[%s2977_s2 + $0x10] sm:$0xff]  ;;  %v803_v17 = vld [vmem:[%s2977_s2 + $0x18] sm:$0xff] }
 0x30e   :  { %v2058_v14 = vpack.c.bf16 %v803_v17, %v802_v13  ;;  %v2098_v31 = vpack.c.bf16 %v1468_v55, %v1467_v53  ;;  %v1160_v17 = vld [vmem:[%s2980_s7 + $0x20] sm:$0xff] }
 0x30f   :  { %v783_v2 = vadd.f32 %v782_v59, %v775_v60  ;;  %v2796_v3 = vadd.f32 %v782_v59, %v776_v61  ;;  %v2798_v4 = vadd.f32 %v782_v59, %v777_v63  ;;  %v2800_v5 = vadd.f32 %v782_v59, %v778_v0  ;;  %v1470_v59 = vld [vmem:[%s2977_s2 + $0x148] sm:$0xff]  ;;  %v1471_v61 = vld [vmem:[%s2977_s2 + $0x150] sm:$0xff]  ;;  %v1472_v63 = vld [vmem:[%s2977_s2 + $0x158] sm:$0xff] }
 0x310   :  { %v2102_v60 = vpack.c.bf16 %v1470_v59, %v1469_v58  ;;  %v2106_v0 = vpack.c.bf16 %v1472_v63, %v1471_v61 }
 0x311   :  { %v787_v8 = vmax.f32 %v783_v2, 0.0  ;;  %v788_v9 = vmax.f32 %v2796_v3, 0.0  ;;  %v789_v10 = vmax.f32 %v2798_v4, 0.0  ;;  %v790_v7 = vmax.f32 %v2800_v5, 0.0  ;;  %v1473_v2 = vld [vmem:[%s2977_s2 + $0x160] sm:$0xff]  ;;  %v1474_v3 = vld [vmem:[%s2977_s2 + $0x168] sm:$0xff] }
 0x312   :  { %v2110_v4 = vpack.c.bf16 %v1474_v3, %v1473_v2  ;;  %v1475_v5 = vld [vmem:[%s2977_s2 + $0x170] sm:$0xff] }
 0x313   :  { %791 = vst [vmem:[#allocation2] sm:$0xff] %v787_v8  ;;  %792 = vst [vmem:[#allocation2 + $0x8] sm:$0xff] %v788_v9 }
 0x314   :  { %793 = vst [vmem:[#allocation2 + $0x10] sm:$0xff] %v789_v10  ;;  %794 = vst [vmem:[#allocation2 + $0x18] sm:$0xff] %v790_v7 }
 0x31a   :  { %v816_v25 = vld [vmem:[#allocation2 + $0x1] sm:$0xff] }
 0x31b   :  { %v817_v11 = vld [vmem:[#allocation2 + $0x9] sm:$0xff]  ;;  %1780 = vmatprep.mubr.f32.mxu0 %v816_v25  ;;  %v818_v54 = vld [vmem:[#allocation2 + $0x11] sm:$0xff]  ;;  %v819_v20 = vld [vmem:[#allocation2 + $0x19] sm:$0xff] }
 0x31c   :  { %1781 = vmatmul.mubr.f32.vlgmr.msra.gmra.mrb[8].mxu0 %v817_v11  ;;  %v1007_v57 = vld [vmem:[#allocation2 + $0x2] sm:$0xff]  ;;  %v1010_v13 = vld [vmem:[#allocation2 + $0x1a] sm:$0xff] }
 0x31d   :  { %2057 = vmatpush3.bf16.msra.mxu0 %v2054_v48  ;;  %1783 = vmatprep.mubr.f32.mxu0 %v818_v54  ;;  %v1464_v48 = vld [vmem:[%s2977_s2 + $0x118] sm:$0xff]  ;;  %v1161_v25 = vld [vmem:[%s2980_s7 + $0x28] sm:$0xff]  ;;  %v1164_v54 = vld [vmem:[%s2980_s7 + $0x40] sm:$0xff] }
 0x31e   :  { %2059 = vmatprep.subr.bf16.mxu0 %v2058_v14  ;;  %v2090_v49 = vpack.c.bf16 %v1464_v48, %v1463_v47  ;;  %v2125_v11 = vpack.c.bf16 %v1161_v25, %v1160_v17 }
 0x320   :  { %1784 = vmatmul.mubr.f32.gmra.mrb[10].mxu0 %v819_v20  ;;  %2126 = vmatpush3.bf16.msra.mxu1 %v2125_v11 }
 0x321   :  { %2061 = vmatpush3.bf16.msra.mxu0 %v2058_v14  ;;  %1818 = vmatprep.mubr.f32.mxu0 %v787_v8  ;;  %v1476_v8 = vld [vmem:[%s2977_s2 + $0x178] sm:$0xff]  ;;  %v1162_v14 = vld [vmem:[%s2980_s7 + $0x30] sm:$0xff] }
 0x322   :  { %2063 = vmatprep.subr.bf16.mxu0 %v2062_v15  ;;  %2127 = vmatprep.subr.bf16.mxu1 %v2158_v26  ;;  %v2128_v38 = vpack.c.bf16 %v1163_v19, %v1162_v14 }
 0x324   :  { %2129 = vmatpush3.bf16.msra.mxu1 %v2128_v38 }
 0x325   :  { %2065 = vmatpush3.bf16.msra.mxu0 %v2062_v15  ;;  %2130 = vmatprep.subr.bf16.mxu1 %v2158_v26  ;;  %v1165_v15 = vld [vmem:[%s2980_s7 + $0x48] sm:$0xff] }
 0x326   :  { %2067 = vmatprep.subr.bf16.mxu0 %v2066_v27  ;;  %v2131_v20 = vpack.c.bf16 %v1165_v15, %v1164_v54 }
 0x328   :  { %2132 = vmatpush3.bf16.msra.mxu1 %v2131_v20 }
 0x329   :  { %2069 = vmatpush3.bf16.msra.mxu0 %v2066_v27  ;;  %2133 = vmatprep.subr.bf16.mxu1 %v2158_v26  ;;  %v2134_v27 = vpack.c.bf16 %v1167_v23, %v1166_v21 }
 0x32a   :  { %2071 = vmatprep.subr.bf16.mxu0 %v2070_v30 }
 0x32c   :  { %2135 = vmatpush3.bf16.msra.mxu1 %v2134_v27 }
 0x32d   :  { %2073 = vmatpush3.bf16.msra.mxu0 %v2070_v30  ;;  %2136 = vmatprep.subr.bf16.mxu1 %v2158_v26  ;;  %v2137_v30 = vpack.c.bf16 %v1169_v29, %v1168_v28 }
 0x32e   :  { %2075 = vmatprep.subr.bf16.mxu0 %v2074_v35 }
 0x330   :  { %2138 = vmatpush3.bf16.msra.mxu1 %v2137_v30 }
 0x331   :  { %2077 = vmatpush3.bf16.msra.mxu0 %v2074_v35  ;;  %v2140_v35 = vpack.c.bf16 %v1171_v33, %v1170_v32  ;;  %2139 = vmatprep.subr.bf16.mxu1 %v2158_v26 }
 0x332   :  { %2079 = vmatprep.subr.bf16.mxu0 %v2078_v40 }
 0x334   :  { %2141 = vmatpush3.bf16.msra.mxu1 %v2140_v35 }
 0x335   :  { %2081 = vmatpush3.bf16.msra.mxu0 %v2078_v40  ;;  %1897 = vmatprep.subr.mxu1 %v2160_v34 }
 0x336   :  { %2083 = vmatprep.subr.bf16.mxu0 %v2082_v43 }
 0x339   :  { %2085 = vmatpush3.bf16.msra.mxu0 %v2082_v43 }
 0x33a   :  { %2087 = vmatprep.subr.bf16.mxu0 %v2086_v46 }
 0x33c   :  { %1819 = vmatmul.mubr.f32.vlgmr.msra.gmra.mrb[8].mxu0 %v788_v9  ;;  %v2114_v9 = vpack.c.bf16 %v1476_v8, %v1475_v5 }
 0x33d   :  { %1821 = vmatprep.mubr.f32.mxu0 %v789_v10  ;;  %2089 = vmatpush3.bf16.msra.mxu0 %v2086_v46  ;;  %v1008_v10 = vld [vmem:[#allocation2 + $0xa] sm:$0xff] }
 0x33e   :  { %2091 = vmatprep.subr.bf16.mxu0 %v2090_v49 }
 0x340   :  { %1822 = vmatmul.mubr.f32.gmra.mrb[10].mxu0 %v790_v7  ;;  %v1009_v7 = vld [vmem:[#allocation2 + $0x12] sm:$0xff] }
 0x341   :  { %2093 = vmatpush3.bf16.msra.mxu0 %v2090_v49  ;;  %1856 = vmatprep.mubr.f32.mxu0 %v1007_v57 }
 0x342   :  { %2095 = vmatprep.subr.bf16.mxu0 %v2094_v52 }
 0x345   :  { %2097 = vmatpush3.bf16.msra.mxu0 %v2094_v52 }
 0x346   :  { %2099 = vmatprep.subr.bf16.mxu0 %v2098_v31 }
 0x349   :  { %2101 = vmatpush3.bf16.msra.mxu0 %v2098_v31 }
 0x34a   :  { %2103 = vmatprep.subr.bf16.mxu0 %v2102_v60 }
 0x34d   :  { %2105 = vmatpush3.bf16.msra.mxu0 %v2102_v60 }
 0x34e   :  { %2107 = vmatprep.subr.bf16.mxu0 %v2106_v0 }
 0x351   :  { %2109 = vmatpush3.bf16.msra.mxu0 %v2106_v0  ;;  %v1278_v0 = vld [vmem:[%s2981_s8] sm:$0xff] }
 0x352   :  { %2111 = vmatprep.subr.bf16.mxu0 %v2110_v4 }
 0x355   :  { %2113 = vmatpush3.bf16.msra.mxu0 %v2110_v4 }
 0x356   :  { %2115 = vmatprep.subr.bf16.mxu0 %v2114_v9 }
 0x359   :  { %2117 = vmatpush3.bf16.msra.mxu0 %v2114_v9 }
 0x35c   :  { %1857 = vmatmul.mubr.f32.vlgmr.msra.gmra.mrb[8].mxu0 %v1008_v10 }
 0x35d   :  { %1859 = vmatprep.mubr.f32.mxu0 %v1009_v7 }
 0x360   :  { %1860 = vmatmul.mubr.f32.gmra.mrb[10].mxu0 %v1010_v13 }
 0x42f   :  { %v1858_v37 = vpop.f32.mrb[8].mxu0 }
 0x430   :  { %v1130_v39 = vsel %vm1118_vm7, %v1858_v37, 0.0  ;;  %v1094_v40 = vpop.f32.mrb[9].mxu0 }
 0x431   :  { %v1143_v41 = vmul.f32 %v1130_v39, %v1130_v39  ;;  %v1133_v42 = vadd.f32 %v1130_v39, %v1094_v40  ;;  %v1142_v43 = vmul.f32 %v1094_v40, %v1094_v40 }
 0x433   :  { %v1146_v44 = vadd.f32 %v1143_v41, %v1142_v43  ;;  %v1861_v45 = vpop.f32.mrb[10].mxu0 }
 0x434   :  { %v1132_v46 = vsel %vm1120_vm8, %v1861_v45, 0.0  ;;  %v1104_v47 = vpop.f32.mrb[11].mxu0 }
 0x435   :  { %v1134_v26 = vadd.f32 %v1133_v42, %v1104_v47  ;;  %v1144_v48 = vmul.f32 %v1104_v47, %v1104_v47  ;;  %v1145_v49 = vmul.f32 %v1132_v46, %v1132_v46 }
 0x437   :  { %v1135_v50 = vadd.f32 %v1134_v26, %v1132_v46  ;;  %v1147_v51 = vadd.f32 %v1146_v44, %v1144_v48 }
 0x439   :  { %v1136_v1 = vrot.slane %v1135_v50, 4  ;;  %v1148_v6 = vadd.f32 %v1147_v51, %v1145_v49 }
 0x43b   :  { %v1137_v52 = vadd.f32 %v1136_v1, %v1135_v50  ;;  %v1149_v53 = vrot.slane %v1148_v6, 4 }
 0x43d   :  { %v1138_v55 = vrot.slane %v1137_v52, 2  ;;  %v1150_v57 = vadd.f32 %v1149_v53, %v1148_v6 }
 0x43f   :  { %v1139_v31 = vadd.f32 %v1138_v55, %v1137_v52  ;;  %v1151_v58 = vrot.slane %v1150_v57, 2 }
 0x441   :  { %v1140_v59 = vrot.slane %v1139_v31, 1  ;;  %v1152_v12 = vadd.f32 %v1151_v58, %v1150_v57 }
 0x443   :  { %v1153_v16 = vrot.slane %v1152_v12, 1  ;;  %v1141_v60 = vadd.f32 %v1140_v59, %v1139_v31 }
 0x445   :  { %v1154_v61 = vadd.f32 %v1153_v16, %v1152_v12 }
 0x447   :  { %v1155_v63 = vsel %vm572_vm5, %v1141_v60, %v1154_v61 }
 0x448   :  { %1895 = vmatmul.mubr.f32.vlgmr.msra.gmra.mrb[20].mxu1 %v1155_v63 }
 0x449   :  { %1899 = vmatprep.mubr.msk.f32.mxu1 %vm2159_vm2, %v2160_v34  ;;  %1898 = vmatpush3.msra.mxu1 %v1278_v0 }
 0x51b   :  { %v1238_v2 = vpop.f32.mrb[20].mxu1 }
 0x51c   :  { %v1242_v3 = vmul.f32 0.0034722222, %v1238_v2  ;;  %v1896_v4 = vpop.f32.mrb[21].mxu1 }
 0x51e   :  { %v1243_v5 = vmul.f32 %v1242_v3, %v1242_v3 }
 0x520   :  { %v1245_v8 = vrot.slane %v1243_v5, 7 }
 0x522   :  { %v1247_v9 = vsub.f32 %v1242_v3, %v1245_v8 }
 0x524   :  { %v1248_v10 = vmax.f32 %v1247_v9, 0.0 }
 0x526   :  { %v1249_v7 = vadd.f32 1e-05, %v1248_v10 }
 0x528   :  { %2156 = vrsqrt.f32 %v1249_v7 }
 0x532   :  { %v2157_v13 = vpop.eup %2156 }
 0x533   :  { %v1258_v17 = vrot.slane %v2157_v13, %v2720_v36 }
 0x535   :  { %v1259_v25 = vcombine.high %v1258_v17, %v1258_v17 }
 0x537   :  { %v1266_v34 = vrot.slane %v1259_v25, %v2720_v36 }
 0x539   :  { %v1268_v11 = vmul.f32 %v1266_v34, %v2726_v18 }
 0x53b   :  { %v1269_v14 = vmul.f32 %v1268_v11, %v1242_v3 }
 0x53d   :  { %v1270_v19 = vsub.f32 %v2733_v22, %v1269_v14 }
 0x53f   :  { %v1275_v38 = vrot.slane %v1270_v19, %v2736_v24 }
 0x541   :  { %v1277_v54 = vsel %vm572_vm5, %v1268_v11, %v1275_v38 }
 0x542   :  { %1900 = vmatmul.mubr.msk.f32.vlgmr.msra.gmra.mrb[22].mxu1 %vm697_vm6, %v1277_v54 }
 0x615   :  { %v1348_v15 = vpop.f32.mrb[22].mxu1 }
 0x616   :  { %v1355_v20 = vrot.slane %v1348_v15, %v2736_v24  ;;  %v1901_v21 = vpop.f32.mrb[23].mxu1  ;;  %v1363_v23 = vrot.slane %v1348_v15, %v781_v56 }
 0x618   :  { %v1356_v27 = vmul.f32 %v1355_v20, %v1094_v40  ;;  %v1357_v36 = vmul.f32 %v1858_v37, %v1355_v20  ;;  %v1358_v28 = vmul.f32 %v1355_v20, %v1104_v47  ;;  %v1359_v18 = vmul.f32 %v1861_v45, %v1355_v20 }
 0x61a   :  { %v1364_v29 = vadd.f32 %v1363_v23, %v1356_v27  ;;  %v1365_v30 = vadd.f32 %v1363_v23, %v1357_v36  ;;  %v1366_v22 = vadd.f32 %v1363_v23, %v1358_v28  ;;  %v1367_v32 = vadd.f32 %v1363_v23, %v1359_v18 }
 0x61c   :  { %v1368_v33 = vmax.f32 %v1364_v29, 0.0  ;;  %v1369_v35 = vmax.f32 %v1365_v30, 0.0  ;;  %v1370_v39 = vmax.f32 %v1366_v22, 0.0  ;;  %v1371_v41 = vmax.f32 %v1367_v32, 0.0 }
 0x61e   :  { %1372 = vst [vmem:[%s2982_s9] sm:$0xff] %v1368_v33  ;;  %1373 = vst [vmem:[%s2982_s9 + $0x8] sm:$0xff] %v1369_v35 }
 0x61f   :  { %1374 = vst [vmem:[%s2982_s9 + $0x10] sm:$0xff] %v1370_v39  ;;  %1375 = vst [vmem:[%s2982_s9 + $0x18] sm:$0xff] %v1371_v41 }

</bundles_post_ra>
